<compile_context>
chip_gen: v7x
topology: tpu7x:2x2x1
jax: 0.10.0
libtpu: 0.0.40
codegen_flags: <defaults>
</compile_context>

<pallas_src>
import jax
import jax.numpy as jnp
from jax.experimental import pallas as pl
from jax.experimental.pallas import tpu as pltpu

# Logical MLP dims from the PyTorch module.
DIMS = [784, 512, 256, 128, 64, 32, 10]
# Lane-padded layer widths: only the tail layers (64/32/10) pad up to 128.
PAD_DIMS = [784, 512, 256, 128, 128, 128, 128]


def _round_up(x, m):
    return (x + m - 1) // m * m


def _choose_batch_tile(B):
    """Batch rows per grid step."""
    if B <= 128:
        return _round_up(B, 8)          # one grid step, minimal padding
    # Large batch: >= 2 grid steps so both v7x TensorCores get work; cap at
    # 512 rows to amortize the ~0.35us per-step overhead on v5e/v6e.
    return min(512, _round_up(pl.cdiv(B, 2), 16))


def _mlp_kernel(x_ref,
                w1, b1, w2, b2, w3, b3, w4, b4, w5, b5, w6, b6,
                o_ref):
    """One batch tile: full 6-layer matmul + ReLU chain on the MXU/VPU."""

    def layer(h, w_ref, b_ref, relu):
        # bf16 MXU operands, f32 accumulation; bias-add / ReLU in f32.
        y = jnp.dot(h, w_ref[...], preferred_element_type=jnp.float32)
        y = y + b_ref[...]               # (1, out) broadcasts over the batch tile
        if relu:
            # Next matmul consumes bf16 anyway; bf16 intermediates halve the
            # inter-layer VMEM load/store traffic.
            return jnp.maximum(y, 0.0).astype(jnp.bfloat16)
        return y

    h = x_ref[...].astype(jnp.bfloat16)  # single in-kernel f32 -> bf16 cast
    h = layer(h, w1, b1, True)
    h = layer(h, w2, b2, True)
    h = layer(h, w3, b3, True)
    h = layer(h, w4, b4, True)
    h = layer(h, w5, b5, True)
    h = layer(h, w6, b6, False)
    o_ref[...] = h.astype(o_ref.dtype)   # bf16 writeback (10 real lanes of 128)


def init_params(key):
    """Unpadded f32 params mirroring torch.nn.Linear's U(-1/sqrt(in), 1/sqrt(in)).

    Weights are stored already transposed to (in, out) so y = x @ W + b."""
    params = []
    for i in range(len(DIMS) - 1):
        fan_in, fan_out = DIMS[i], DIMS[i + 1]
        key, kw, kb = jax.random.split(key, 3)
        bound = 1.0 / jnp.sqrt(float(fan_in))
        w = jax.random.uniform(kw, (fan_in, fan_out), jnp.float32, -bound, bound)
        b = jax.random.uniform(kb, (1, fan_out), jnp.float32, -bound, bound)
        params.append((w, b))
    return params


def prepare_params(params):
    """Zero-pad tail layers to PAD_DIMS; weights -> bf16, biases stay f32.

    Returns a flat list [w1, b1, ..., w6, b6] ready for the kernel. Call once."""
    flat = []
    for i, (w, b) in enumerate(params):
        ip, op = PAD_DIMS[i], PAD_DIMS[i + 1]
        wp = jnp.zeros((ip, op), jnp.float32).at[:w.shape[0], :w.shape[1]].set(w)
        bp = jnp.zeros((1, op), jnp.float32).at[:, :b.shape[1]].set(b)
        flat += [wp.astype(jnp.bfloat16), bp]
    return flat


@jax.jit
def net_forward(x, flat_params):
    """x: (B, 1, 28, 28) (any shape with trailing 784 elems). flat_params: prepared."""
    B = x.shape[0]
    x2d = x.reshape(B, DIMS[0]).astype(jnp.float32)

    TB = _choose_batch_tile(B)
    b_tiles = pl.cdiv(B, TB)
    Bp = b_tiles * TB
    if Bp != B:
        # Only when B isn't tile-aligned; the aligned (harness) path copies nothing.
        x2d = jnp.pad(x2d, ((0, Bp - B), (0, 0)))

    # Activations/outputs tile over the batch grid; weights/biases stay resident
    # (constant block index, single buffer -> fetched once, kept in VMEM).
    in_specs = [pl.BlockSpec((TB, DIMS[0]), lambda i: (i, 0))]
    for p in flat_params:
        in_specs.append(
            pl.BlockSpec(p.shape, lambda i: (0, 0), pipeline_mode=pl.Buffered(1)))

    flops = 2 * Bp * sum(PAD_DIMS[i] * PAD_DIMS[i + 1]
                         for i in range(len(PAD_DIMS) - 1))
    bytes_accessed = (x2d.size * 4
                      + sum(p.size * p.dtype.itemsize for p in flat_params)
                      + Bp * PAD_DIMS[-1] * 2)

    out = pl.pallas_call(
        _mlp_kernel,
        out_shape=jax.ShapeDtypeStruct((Bp, PAD_DIMS[-1]), jnp.bfloat16),
        grid=(b_tiles,),
        in_specs=in_specs,
        out_specs=pl.BlockSpec((TB, PAD_DIMS[-1]), lambda i: (i, 0)),
        compiler_params=pltpu.CompilerParams(
            dimension_semantics=("parallel",)),
        cost_estimate=pl.CostEstimate(
            flops=flops, transcendentals=0, bytes_accessed=bytes_accessed),
    )(x2d, *flat_params)

    # Slice padded batch rows / padded logit lanes; return f32 logits.
    return out[:B, :DIMS[-1]].astype(jnp.float32)


def reference_forward_f32(x, params):
    """Pure f32 reference (exact torch semantics)."""
    B = x.shape[0]
    h = x.reshape(B, DIMS[0]).astype(jnp.float32)
    for i, (w, b) in enumerate(params):
        h = h @ w + b
        if i < len(params) - 1:
            h = jnp.maximum(h, 0.0)
    return h


def reference_forward_bf16(x, params):
    """Reference mirroring the kernel dataflow: bf16 operands, f32 accumulate,
    bf16 intermediates and bf16 output."""
    B = x.shape[0]
    h = x.reshape(B, DIMS[0]).astype(jnp.bfloat16)
    for i, (w, b) in enumerate(params):
        y = jnp.dot(h, w.astype(jnp.bfloat16),
                    preferred_element_type=jnp.float32) + b
        if i < len(params) - 1:
            h = jnp.maximum(y, 0.0).astype(jnp.bfloat16)
        else:
            h = y.astype(jnp.bfloat16)
    return h.astype(jnp.float32)


if __name__ == "__main__":
    key = jax.random.PRNGKey(0)
    key, kx = jax.random.split(key)

    # MNIST-style NCHW input: (batch=8, channels=1, 28, 28)
    x = jax.random.normal(kx, (8, 1, 28, 28), jnp.float32)
    params = init_params(key)
    flat_params = prepare_params(params)

    out = jax.block_until_ready(net_forward(x, flat_params))
    assert out.shape == (8, 10), out.shape

    # Tight check vs a reference that matches the kernel's bf16 dataflow.
    ref_bf16 = reference_forward_bf16(x, params)
    assert jnp.allclose(out, ref_bf16, atol=2e-2, rtol=2e-2), \
        "mismatch vs bf16-matched reference"

    # Loose sanity check vs the exact f32 torch semantics.
    ref_f32 = reference_forward_f32(x, params)
    assert jnp.allclose(out, ref_f32, atol=1e-1, rtol=1e-1), \
        "mismatch vs f32 reference"

    print("KERNEL_OK")
</pallas_src>

<mosaic_0001>
module attributes {stable_mosaic.version = 11 : i64} {
  func.func @_mlp_kernel(%arg0: i32, %arg1: memref<8x784xf32, #tpu.memory_space<vmem>>, %arg2: memref<784x512xbf16, #tpu.memory_space<vmem>>, %arg3: memref<1x512xf32, #tpu.memory_space<vmem>>, %arg4: memref<512x256xbf16, #tpu.memory_space<vmem>>, %arg5: memref<1x256xf32, #tpu.memory_space<vmem>>, %arg6: memref<256x128xbf16, #tpu.memory_space<vmem>>, %arg7: memref<1x128xf32, #tpu.memory_space<vmem>>, %arg8: memref<128x128xbf16, #tpu.memory_space<vmem>>, %arg9: memref<1x128xf32, #tpu.memory_space<vmem>>, %arg10: memref<128x128xbf16, #tpu.memory_space<vmem>>, %arg11: memref<1x128xf32, #tpu.memory_space<vmem>>, %arg12: memref<128x128xbf16, #tpu.memory_space<vmem>>, %arg13: memref<1x128xf32, #tpu.memory_space<vmem>>, %arg14: memref<8x128xbf16, #tpu.memory_space<vmem>>) attributes {dimension_semantics = [#tpu.dimension_semantics<parallel>], iteration_bounds = array<i64: 1>, scalar_prefetch = 0 : i64, scratch_operands = 0 : i64, tpu.core_type = #tpu.core_type<tc>, window_params = [{transform_indices = @transform_0, window_bounds = array<i64: 8, 784>}, {pipeline_mode = #tpu.pipeline_mode<synchronous>, transform_indices = @transform_1, window_bounds = array<i64: 784, 512>}, {pipeline_mode = #tpu.pipeline_mode<synchronous>, transform_indices = @transform_2, window_bounds = array<i64: 1, 512>}, {pipeline_mode = #tpu.pipeline_mode<synchronous>, transform_indices = @transform_3, window_bounds = array<i64: 512, 256>}, {pipeline_mode = #tpu.pipeline_mode<synchronous>, transform_indices = @transform_4, window_bounds = array<i64: 1, 256>}, {pipeline_mode = #tpu.pipeline_mode<synchronous>, transform_indices = @transform_5, window_bounds = array<i64: 256, 128>}, {pipeline_mode = #tpu.pipeline_mode<synchronous>, transform_indices = @transform_6, window_bounds = array<i64: 1, 128>}, {pipeline_mode = #tpu.pipeline_mode<synchronous>, transform_indices = @transform_7, window_bounds = array<i64: 128, 128>}, {pipeline_mode = #tpu.pipeline_mode<synchronous>, transform_indices = @transform_8, window_bounds = array<i64: 1, 128>}, {pipeline_mode = #tpu.pipeline_mode<synchronous>, transform_indices = @transform_9, window_bounds = array<i64: 128, 128>}, {pipeline_mode = #tpu.pipeline_mode<synchronous>, transform_indices = @transform_10, window_bounds = array<i64: 1, 128>}, {pipeline_mode = #tpu.pipeline_mode<synchronous>, transform_indices = @transform_11, window_bounds = array<i64: 128, 128>}, {pipeline_mode = #tpu.pipeline_mode<synchronous>, transform_indices = @transform_12, window_bounds = array<i64: 1, 128>}, {transform_indices = @transform_13, window_bounds = array<i64: 8, 128>}]} {
    %c0 = arith.constant 0 : index
    %c0_0 = arith.constant 0 : index
    %0 = vector.load %arg1[%c0, %c0_0] : memref<8x784xf32, #tpu.memory_space<vmem>>, vector<8x784xf32>
    %1 = arith.truncf %0 : vector<8x784xf32> to vector<8x784xbf16>
    %c0_1 = arith.constant 0 : index
    %c0_2 = arith.constant 0 : index
    %2 = vector.load %arg2[%c0_1, %c0_2] : memref<784x512xbf16, #tpu.memory_space<vmem>>, vector<784x512xbf16>
    %cst = arith.constant dense<0.000000e+00> : vector<8x512xf32>
    %3 = tpu.matmul %1, %2, %cst {dimension_numbers = #tpu.dot_dimension_numbers<[1], [0], [0], [1], [0, 0, 1, 1], [], []>} : vector<8x784xbf16>, vector<784x512xbf16>, vector<8x512xf32> -> vector<8x512xf32>
    %c0_3 = arith.constant 0 : index
    %c0_4 = arith.constant 0 : index
    %4 = vector.load %arg3[%c0_3, %c0_4] : memref<1x512xf32, #tpu.memory_space<vmem>>, vector<1x512xf32>
    %5 = vector.broadcast %4 : vector<1x512xf32> to vector<8x512xf32>
    %6 = arith.addf %3, %5 : vector<8x512xf32>
    %cst_5 = arith.constant 0.000000e+00 : f32
    %7 = vector.broadcast %cst_5 : f32 to vector<8x512xf32>
    %8 = arith.maximumf %6, %7 : vector<8x512xf32>
    %9 = arith.truncf %8 : vector<8x512xf32> to vector<8x512xbf16>
    %c0_6 = arith.constant 0 : index
    %c0_7 = arith.constant 0 : index
    %10 = vector.load %arg4[%c0_6, %c0_7] : memref<512x256xbf16, #tpu.memory_space<vmem>>, vector<512x256xbf16>
    %cst_8 = arith.constant dense<0.000000e+00> : vector<8x256xf32>
    %11 = tpu.matmul %9, %10, %cst_8 {dimension_numbers = #tpu.dot_dimension_numbers<[1], [0], [0], [1], [0, 0, 1, 1], [], []>} : vector<8x512xbf16>, vector<512x256xbf16>, vector<8x256xf32> -> vector<8x256xf32>
    %c0_9 = arith.constant 0 : index
    %c0_10 = arith.constant 0 : index
    %12 = vector.load %arg5[%c0_9, %c0_10] : memref<1x256xf32, #tpu.memory_space<vmem>>, vector<1x256xf32>
    %13 = vector.broadcast %12 : vector<1x256xf32> to vector<8x256xf32>
    %14 = arith.addf %11, %13 : vector<8x256xf32>
    %cst_11 = arith.constant 0.000000e+00 : f32
    %15 = vector.broadcast %cst_11 : f32 to vector<8x256xf32>
    %16 = arith.maximumf %14, %15 : vector<8x256xf32>
    %17 = arith.truncf %16 : vector<8x256xf32> to vector<8x256xbf16>
    %c0_12 = arith.constant 0 : index
    %c0_13 = arith.constant 0 : index
    %18 = vector.load %arg6[%c0_12, %c0_13] : memref<256x128xbf16, #tpu.memory_space<vmem>>, vector<256x128xbf16>
    %cst_14 = arith.constant dense<0.000000e+00> : vector<8x128xf32>
    %19 = tpu.matmul %17, %18, %cst_14 {dimension_numbers = #tpu.dot_dimension_numbers<[1], [0], [0], [1], [0, 0, 1, 1], [], []>} : vector<8x256xbf16>, vector<256x128xbf16>, vector<8x128xf32> -> vector<8x128xf32>
    %c0_15 = arith.constant 0 : index
    %c0_16 = arith.constant 0 : index
    %20 = vector.load %arg7[%c0_15, %c0_16] : memref<1x128xf32, #tpu.memory_space<vmem>>, vector<1x128xf32>
    %21 = vector.broadcast %20 : vector<1x128xf32> to vector<8x128xf32>
    %22 = arith.addf %19, %21 : vector<8x128xf32>
    %cst_17 = arith.constant 0.000000e+00 : f32
    %23 = vector.broadcast %cst_17 : f32 to vector<8x128xf32>
    %24 = arith.maximumf %22, %23 : vector<8x128xf32>
    %25 = arith.truncf %24 : vector<8x128xf32> to vector<8x128xbf16>
    %c0_18 = arith.constant 0 : index
    %c0_19 = arith.constant 0 : index
    %26 = vector.load %arg8[%c0_18, %c0_19] : memref<128x128xbf16, #tpu.memory_space<vmem>>, vector<128x128xbf16>
    %cst_20 = arith.constant dense<0.000000e+00> : vector<8x128xf32>
    %27 = tpu.matmul %25, %26, %cst_20 {dimension_numbers = #tpu.dot_dimension_numbers<[1], [0], [0], [1], [0, 0, 1, 1], [], []>} : vector<8x128xbf16>, vector<128x128xbf16>, vector<8x128xf32> -> vector<8x128xf32>
    %c0_21 = arith.constant 0 : index
    %c0_22 = arith.constant 0 : index
    %28 = vector.load %arg9[%c0_21, %c0_22] : memref<1x128xf32, #tpu.memory_space<vmem>>, vector<1x128xf32>
    %29 = vector.broadcast %28 : vector<1x128xf32> to vector<8x128xf32>
    %30 = arith.addf %27, %29 : vector<8x128xf32>
    %cst_23 = arith.constant 0.000000e+00 : f32
    %31 = vector.broadcast %cst_23 : f32 to vector<8x128xf32>
    %32 = arith.maximumf %30, %31 : vector<8x128xf32>
    %33 = arith.truncf %32 : vector<8x128xf32> to vector<8x128xbf16>
    %c0_24 = arith.constant 0 : index
    %c0_25 = arith.constant 0 : index
    %34 = vector.load %arg10[%c0_24, %c0_25] : memref<128x128xbf16, #tpu.memory_space<vmem>>, vector<128x128xbf16>
    %cst_26 = arith.constant dense<0.000000e+00> : vector<8x128xf32>
    %35 = tpu.matmul %33, %34, %cst_26 {dimension_numbers = #tpu.dot_dimension_numbers<[1], [0], [0], [1], [0, 0, 1, 1], [], []>} : vector<8x128xbf16>, vector<128x128xbf16>, vector<8x128xf32> -> vector<8x128xf32>
    %c0_27 = arith.constant 0 : index
    %c0_28 = arith.constant 0 : index
    %36 = vector.load %arg11[%c0_27, %c0_28] : memref<1x128xf32, #tpu.memory_space<vmem>>, vector<1x128xf32>
    %37 = vector.broadcast %36 : vector<1x128xf32> to vector<8x128xf32>
    %38 = arith.addf %35, %37 : vector<8x128xf32>
    %cst_29 = arith.constant 0.000000e+00 : f32
    %39 = vector.broadcast %cst_29 : f32 to vector<8x128xf32>
    %40 = arith.maximumf %38, %39 : vector<8x128xf32>
    %41 = arith.truncf %40 : vector<8x128xf32> to vector<8x128xbf16>
    %c0_30 = arith.constant 0 : index
    %c0_31 = arith.constant 0 : index
    %42 = vector.load %arg12[%c0_30, %c0_31] : memref<128x128xbf16, #tpu.memory_space<vmem>>, vector<128x128xbf16>
    %cst_32 = arith.constant dense<0.000000e+00> : vector<8x128xf32>
    %43 = tpu.matmul %41, %42, %cst_32 {dimension_numbers = #tpu.dot_dimension_numbers<[1], [0], [0], [1], [0, 0, 1, 1], [], []>} : vector<8x128xbf16>, vector<128x128xbf16>, vector<8x128xf32> -> vector<8x128xf32>
    %c0_33 = arith.constant 0 : index
    %c0_34 = arith.constant 0 : index
    %44 = vector.load %arg13[%c0_33, %c0_34] : memref<1x128xf32, #tpu.memory_space<vmem>>, vector<1x128xf32>
    %45 = vector.broadcast %44 : vector<1x128xf32> to vector<8x128xf32>
    %46 = arith.addf %43, %45 : vector<8x128xf32>
    %47 = arith.truncf %46 : vector<8x128xf32> to vector<8x128xbf16>
    %c0_35 = arith.constant 0 : index
    %c0_36 = arith.constant 0 : index
    %48 = vector.load %arg14[%c0_35, %c0_36] : memref<8x128xbf16, #tpu.memory_space<vmem>>, vector<8x128xbf16>
    tpu.vector_store %arg14[%c0_35, %c0_36], %47 {strides = array<i32>} : memref<8x128xbf16, #tpu.memory_space<vmem>>, vector<8x128xbf16>,
    return
  }
  func.func @transform_0(%arg0: i32) -> (i32, i32) {
    %c0_i32 = arith.constant 0 : i32
    %c0_i32_0 = arith.constant 0 : i32
    return %arg0, %c0_i32 : i32, i32
  }
  func.func @transform_1(%arg0: i32) -> (i32, i32) {
    %c0_i32 = arith.constant 0 : i32
    %c0_i32_0 = arith.constant 0 : i32
    %c0_i32_1 = arith.constant 0 : i32
    return %c0_i32, %c0_i32_0 : i32, i32
  }
  func.func @transform_2(%arg0: i32) -> (i32, i32) {
    %c0_i32 = arith.constant 0 : i32
    %c0_i32_0 = arith.constant 0 : i32
    %c0_i32_1 = arith.constant 0 : i32
    return %c0_i32, %c0_i32_0 : i32, i32
  }
  func.func @transform_3(%arg0: i32) -> (i32, i32) {
    %c0_i32 = arith.constant 0 : i32
    %c0_i32_0 = arith.constant 0 : i32
    %c0_i32_1 = arith.constant 0 : i32
    return %c0_i32, %c0_i32_0 : i32, i32
  }
  func.func @transform_4(%arg0: i32) -> (i32, i32) {
    %c0_i32 = arith.constant 0 : i32
    %c0_i32_0 = arith.constant 0 : i32
    %c0_i32_1 = arith.constant 0 : i32
    return %c0_i32, %c0_i32_0 : i32, i32
  }
  func.func @transform_5(%arg0: i32) -> (i32, i32) {
    %c0_i32 = arith.constant 0 : i32
    %c0_i32_0 = arith.constant 0 : i32
    %c0_i32_1 = arith.constant 0 : i32
    return %c0_i32, %c0_i32_0 : i32, i32
  }
  func.func @transform_6(%arg0: i32) -> (i32, i32) {
    %c0_i32 = arith.constant 0 : i32
    %c0_i32_0 = arith.constant 0 : i32
    %c0_i32_1 = arith.constant 0 : i32
    return %c0_i32, %c0_i32_0 : i32, i32
  }
  func.func @transform_7(%arg0: i32) -> (i32, i32) {
    %c0_i32 = arith.constant 0 : i32
    %c0_i32_0 = arith.constant 0 : i32
    %c0_i32_1 = arith.constant 0 : i32
    return %c0_i32, %c0_i32_0 : i32, i32
  }
  func.func @transform_8(%arg0: i32) -> (i32, i32) {
    %c0_i32 = arith.constant 0 : i32
    %c0_i32_0 = arith.constant 0 : i32
    %c0_i32_1 = arith.constant 0 : i32
    return %c0_i32, %c0_i32_0 : i32, i32
  }
  func.func @transform_9(%arg0: i32) -> (i32, i32) {
    %c0_i32 = arith.constant 0 : i32
    %c0_i32_0 = arith.constant 0 : i32
    %c0_i32_1 = arith.constant 0 : i32
    return %c0_i32, %c0_i32_0 : i32, i32
  }
  func.func @transform_10(%arg0: i32) -> (i32, i32) {
    %c0_i32 = arith.constant 0 : i32
    %c0_i32_0 = arith.constant 0 : i32
    %c0_i32_1 = arith.constant 0 : i32
    return %c0_i32, %c0_i32_0 : i32, i32
  }
  func.func @transform_11(%arg0: i32) -> (i32, i32) {
    %c0_i32 = arith.constant 0 : i32
    %c0_i32_0 = arith.constant 0 : i32
    %c0_i32_1 = arith.constant 0 : i32
    return %c0_i32, %c0_i32_0 : i32, i32
  }
  func.func @transform_12(%arg0: i32) -> (i32, i32) {
    %c0_i32 = arith.constant 0 : i32
    %c0_i32_0 = arith.constant 0 : i32
    %c0_i32_1 = arith.constant 0 : i32
    return %c0_i32, %c0_i32_0 : i32, i32
  }
  func.func @transform_13(%arg0: i32) -> (i32, i32) {
    %c0_i32 = arith.constant 0 : i32
    %c0_i32_0 = arith.constant 0 : i32
    return %arg0, %c0_i32 : i32, i32
  }
}

</mosaic_0001>

<bundles_post_ra>
// kernel: net_forward.1
= control target key start
LH: loop header
LB: loop body
LE: loop exit
PB: predicated region body
PF: predicated region fallthrough
CT: control target
= control target key end

     0   :  { %18 = vsyncpa [#allocation3], 0  ;;  %s4051_s0 = inlined_call_operand.vmem [shape: f32[8,784], index: 0, kind: input, shape index: {}]   ;;  %s4052_s1 = inlined_call_operand.hbm [shape: bf16[784,512], index: 1, kind: input, shape index: {}]   ;;  %s4053_s2 = inlined_call_operand.vmem [shape: f32[1,512], index: 2, kind: input, shape index: {}]   ;;  %s4054_s3 = inlined_call_operand.vmem [shape: bf16[512,256], index: 3, kind: input, shape index: {}]   ;;  %s4055_s4 = inlined_call_operand.vmem [shape: f32[1,256], index: 4, kind: input, shape index: {}]   ;;  %s4056_s5 = inlined_call_operand.vmem [shape: bf16[256,128], index: 5, kind: input, shape index: {}]   ;;  %s4057_s6 = inlined_call_operand.vmem [shape: f32[1,128], index: 6, kind: input, shape index: {}]   ;;  %s4058_s7 = inlined_call_operand.vmem [shape: bf16[128,128], index: 7, kind: input, shape index: {}]   ;;  %s4059_s8 = inlined_call_operand.vmem [shape: f32[1,128], index: 8, kind: input, shape index: {}]   ;;  %s4060_s9 = inlined_call_operand.vmem [shape: bf16[128,128], index: 9, kind: input, shape index: {}]   ;;  %s4061_s10 = inlined_call_operand.vmem [shape: f32[1,128], index: 10, kind: input, shape index: {}]   ;;  %s4062_s11 = inlined_call_operand.hbm [shape: bf16[128,128], index: 11, kind: input, shape index: {}]   ;;  %s4063_s12 = inlined_call_operand.vmem [shape: f32[1,128], index: 12, kind: input, shape index: {}]   ;;  %s4064_s13 = inlined_call_operand.vmem [shape: bf16[8,128], index: 13, kind: output, shape index: {}]  }
   0x1   :  { %19 = vsyncpa [#allocation5], 0  ;;  %s3565_s25 = smov [#allocation2]   ;;  %s3517_s29 = scalar_lea.hbm %s4052_s1, 25088 }
   0x2   :  { %s27_s26 = sshll.u32 %s3565_s25, 4  ;;  %p3518_p0 = scmp.ne.s32.totalorder %s4052_s1, %s3517_s29  ;;  %s28_s26 = int_to_ptr.vmem [resolvable:$true] %s27_s26 }
   0x3   :  { %p3521_p1 = scmp.lt.u32.totalorder %s3517_s29, %s4052_s1 }
   0x5   :  { %p3523_p2 = pnand %p3521_p1, %p3518_p0 }
   0x7   :  { %3526 = shalt.err (!%p3523_p2)
}
   0x8   :  { %s3527_s17 = scalar_lea.vmem %s28_s26, 25088  ;;  %p3532_p4 = scmp.lt.s32.totalorder %s28_s26, %s28_s26 }
   0x9   :  { %p3528_p3 = scmp.ne.s32.totalorder %s28_s26, %s3527_s17  ;;  %p3533_p5 = scmp.lt.s32.totalorder %s3527_s17, %s3527_s17 }
   0xb   :  { %p3534_p6 = por %p3533_p5, %p3532_p4 }
   0xd   :  { %p3535_p7 = pnand %p3534_p6, %p3528_p3 }
   0xf   :  { %3538 = shalt.err (!%p3535_p7)
}
  0x10   :  { %s3566_s18 = smov 256   ;;  %s3567_s19 = smov 16  }
  0x11   :  { %33 = dma.hbm_to_vmem [thread:$0]  %s4052_s1, 25088, %s28_s26, [#allocation3], %s3566_s18, %s3566_s18, %s3567_s19  }
  0x12   :  { %s3568_s22 = smov [#allocation4]   ;;  %s3539_s27 = scalar_lea.hbm %s4062_s11, 1024 }
  0x13   :  { %s57_s23 = sshll.u32 %s3568_s22, 4  ;;  %p3540_p8 = scmp.ne.s32.totalorder %s4062_s11, %s3539_s27  ;;  %s58_s23 = int_to_ptr.vmem [resolvable:$true] %s57_s23 }
  0x14   :  { %p3543_p9 = scmp.lt.u32.totalorder %s3539_s27, %s4062_s11 }
  0x16   :  { %p3545_p10 = pnand %p3543_p9, %p3540_p8 }
  0x18   :  { %3548 = shalt.err (!%p3545_p10)
}
  0x19   :  { %s3549_s15 = scalar_lea.vmem %s58_s23, 1024  ;;  %p3554_p12 = scmp.lt.s32.totalorder %s58_s23, %s58_s23 }
  0x1a   :  { %p3550_p11 = scmp.ne.s32.totalorder %s58_s23, %s3549_s15  ;;  %p3555_p13 = scmp.lt.s32.totalorder %s3549_s15, %s3549_s15 }
  0x1c   :  { %p3556_p0 = por %p3555_p13, %p3554_p12 }
  0x1e   :  { %p3557_p1 = pnand %p3556_p0, %p3550_p11 }
  0x20   :  { %3560 = shalt.err (!%p3557_p1)
}
  0x21   :  { %s3569_s1 = smov 64   ;;  %s3570_s26 = smov 4  }
  0x22   :  { %63 = dma.hbm_to_vmem [thread:$0]  %s4062_s11, 1024, %s58_s23, [#allocation5], %s3569_s1, %s3569_s1, %s3570_s26  }
  0x23   :  { %3561 = dma.done.wait [#allocation3], 25088  }
  0x24   :  { %3562 = vsyncadd [#allocation3], 4294942208 }
  0x25   :  { %3563 = dma.done.wait [#allocation5], 1024  }
  0x26   :  { %3564 = vsyncadd [#allocation5], 4294966272  ;;  %v3087_v0 = vld [vmem:[#allocation2 + $0x4] ss:$16 sps:$4 sm:$0xff]   ;;  %v3089_v1 = vld [vmem:[#allocation2 + $0xc] ss:$16 sps:$4 sm:$0xff]  }
  0x27   :  { %1289 = vmatprep.subr.bf16.mxu0 %v3087_v0  ;;  %v3091_v2 = vld [vmem:[#allocation2] ss:$16 sps:$4 sm:$0xff]   ;;  %v3092_v3 = vld [vmem:[#allocation2 + $0x8] ss:$16 sps:$4 sm:$0xff]   ;;  %1453 = vmatprep.subr.bf16.mxu1 %v3089_v1  ;;  %v3093_v4 = vld [vmem:[#allocation2 + $0x24] ss:$16 sps:$4 sm:$0xff]  }
  0x28   :  { %1290 = vmatpush1.bf16.msra.mxu0 %v3091_v2  ;;  %1454 = vmatpush1.bf16.msra.mxu1 %v3092_v3  ;;  %v3095_v5 = vld [vmem:[#allocation2 + $0x2c] ss:$16 sps:$4 sm:$0xff]   ;;  %v3097_v6 = vld [vmem:[#allocation2 + $0x20] ss:$16 sps:$4 sm:$0xff]   ;;  %v3098_v7 = vld [vmem:[#allocation2 + $0x28] ss:$16 sps:$4 sm:$0xff]  }
  0x29   :  { %1291 = vmatprep.subr.bf16.mxu0 %v3093_v4  ;;  %1455 = vmatprep.subr.bf16.mxu1 %v3095_v5  ;;  %v3099_v8 = vld [vmem:[#allocation2 + $0x44] ss:$16 sps:$4 sm:$0xff]   ;;  %v3101_v9 = vld [vmem:[#allocation2 + $0x4c] ss:$16 sps:$4 sm:$0xff]   ;;  %v3103_v10 = vld [vmem:[#allocation2 + $0x40] ss:$16 sps:$4 sm:$0xff]  }
  0x2a   :  { %v3104_v11 = vld [vmem:[#allocation2 + $0x48] ss:$16 sps:$4 sm:$0xff]   ;;  %v3105_v12 = vld [vmem:[#allocation2 + $0x64] ss:$16 sps:$4 sm:$0xff]   ;;  %v3107_v13 = vld [vmem:[#allocation2 + $0x6c] ss:$16 sps:$4 sm:$0xff]  }
  0x2b   :  { %v3109_v14 = vld [vmem:[#allocation2 + $0x60] ss:$16 sps:$4 sm:$0xff]   ;;  %v3110_v15 = vld [vmem:[#allocation2 + $0x68] ss:$16 sps:$4 sm:$0xff]   ;;  %v3111_v16 = vld [vmem:[#allocation2 + $0x84] ss:$16 sps:$4 sm:$0xff]  }
  0x2c   :  { %1292 = vmatpush1.bf16.msra.mxu0 %v3097_v6  ;;  %1456 = vmatpush1.bf16.msra.mxu1 %v3098_v7  ;;  %v3113_v17 = vld [vmem:[#allocation2 + $0x8c] ss:$16 sps:$4 sm:$0xff]   ;;  %v3115_v18 = vld [vmem:[#allocation2 + $0x80] ss:$16 sps:$4 sm:$0xff]   ;;  %v3116_v19 = vld [vmem:[#allocation2 + $0x88] ss:$16 sps:$4 sm:$0xff]  }
  0x2d   :  { %1293 = vmatprep.subr.bf16.mxu0 %v3099_v8  ;;  %1457 = vmatprep.subr.bf16.mxu1 %v3101_v9  ;;  %v3117_v20 = vld [vmem:[#allocation2 + $0xa4] ss:$16 sps:$4 sm:$0xff]   ;;  %v3119_v21 = vld [vmem:[#allocation2 + $0xac] ss:$16 sps:$4 sm:$0xff]   ;;  %v3121_v22 = vld [vmem:[#allocation2 + $0xa0] ss:$16 sps:$4 sm:$0xff]  }
  0x2e   :  { %v3122_v23 = vld [vmem:[#allocation2 + $0xa8] ss:$16 sps:$4 sm:$0xff]   ;;  %v3123_v24 = vld [vmem:[#allocation2 + $0xc4] ss:$16 sps:$4 sm:$0xff]   ;;  %v3125_v25 = vld [vmem:[#allocation2 + $0xcc] ss:$16 sps:$4 sm:$0xff]  }
  0x2f   :  { %v3127_v26 = vld [vmem:[#allocation2 + $0xc0] ss:$16 sps:$4 sm:$0xff]   ;;  %v3128_v27 = vld [vmem:[#allocation2 + $0xc8] ss:$16 sps:$4 sm:$0xff]   ;;  %v3129_v28 = vld [vmem:[#allocation2 + $0xe4] ss:$16 sps:$4 sm:$0xff]  }
  0x30   :  { %1294 = vmatpush1.bf16.msra.mxu0 %v3103_v10  ;;  %1458 = vmatpush1.bf16.msra.mxu1 %v3104_v11  ;;  %v3131_v29 = vld [vmem:[#allocation2 + $0xec] ss:$16 sps:$4 sm:$0xff]   ;;  %v3133_v30 = vld [vmem:[#allocation2 + $0xe0] ss:$16 sps:$4 sm:$0xff]   ;;  %v3134_v31 = vld [vmem:[#allocation2 + $0xe8] ss:$16 sps:$4 sm:$0xff]  }
  0x31   :  { %1295 = vmatprep.subr.bf16.mxu0 %v3105_v12  ;;  %1459 = vmatprep.subr.bf16.mxu1 %v3107_v13  ;;  %v3135_v32 = vld [vmem:[#allocation2 + $0x104] ss:$16 sps:$4 sm:$0xff]   ;;  %v3137_v33 = vld [vmem:[#allocation2 + $0x10c] ss:$16 sps:$4 sm:$0xff]   ;;  %v3139_v34 = vld [vmem:[#allocation2 + $0x100] ss:$16 sps:$4 sm:$0xff]  }
  0x32   :  { %v3140_v35 = vld [vmem:[#allocation2 + $0x108] ss:$16 sps:$4 sm:$0xff]   ;;  %v3141_v36 = vld [vmem:[#allocation2 + $0x124] ss:$16 sps:$4 sm:$0xff]   ;;  %v3143_v37 = vld [vmem:[#allocation2 + $0x12c] ss:$16 sps:$4 sm:$0xff]  }
  0x33   :  { %v3145_v38 = vld [vmem:[#allocation2 + $0x120] ss:$16 sps:$4 sm:$0xff]   ;;  %v3146_v39 = vld [vmem:[#allocation2 + $0x128] ss:$16 sps:$4 sm:$0xff]   ;;  %v3147_v40 = vld [vmem:[#allocation2 + $0x144] ss:$16 sps:$4 sm:$0xff]  }
  0x34   :  { %1296 = vmatpush1.bf16.msra.mxu0 %v3109_v14  ;;  %1460 = vmatpush1.bf16.msra.mxu1 %v3110_v15  ;;  %v3149_v41 = vld [vmem:[#allocation2 + $0x14c] ss:$16 sps:$4 sm:$0xff]   ;;  %v3151_v42 = vld [vmem:[#allocation2 + $0x140] ss:$16 sps:$4 sm:$0xff]   ;;  %v3152_v43 = vld [vmem:[#allocation2 + $0x148] ss:$16 sps:$4 sm:$0xff]  }
  0x35   :  { %1297 = vmatprep.subr.bf16.mxu0 %v3111_v16  ;;  %1461 = vmatprep.subr.bf16.mxu1 %v3113_v17  ;;  %v3153_v44 = vld [vmem:[#allocation2 + $0x164] ss:$16 sps:$4 sm:$0xff]   ;;  %v3155_v45 = vld [vmem:[#allocation2 + $0x16c] ss:$16 sps:$4 sm:$0xff]   ;;  %v3157_v47 = vld [vmem:[#allocation2 + $0x160] ss:$16 sps:$4 sm:$0xff]  }
  0x36   :  { %v74_v46 = vld [vmem:[%s4051_s0 + $0x8] sm:$0xff]  ;;  %v3159_v50 = vld [vmem:[#allocation2 + $0x184] ss:$16 sps:$4 sm:$0xff]   ;;  %v3163_v52 = vld [vmem:[#allocation2 + $0x180] ss:$16 sps:$4 sm:$0xff]   ;;  %vm1285_vm0 = vcmask 130048  }
  0x37   :  { %v81_v48 = vpack.c.bf16 %v74_v46, %v74_v46  ;;  %v3158_v49 = vld [vmem:[#allocation2 + $0x168] ss:$16 sps:$4 sm:$0xff]   ;;  %v3161_v51 = vld [vmem:[#allocation2 + $0x18c] ss:$16 sps:$4 sm:$0xff]   ;;  %v3165_v54 = vld [vmem:[#allocation2 + $0x1a4] ss:$16 sps:$4 sm:$0xff]  }
  0x38   :  { %1298 = vmatpush1.bf16.msra.mxu0 %v3115_v18  ;;  %1462 = vmatpush1.bf16.msra.mxu1 %v3116_v19  ;;  %v3164_v53 = vld [vmem:[#allocation2 + $0x188] ss:$16 sps:$4 sm:$0xff]   ;;  %v3167_v55 = vld [vmem:[#allocation2 + $0x1ac] ss:$16 sps:$4 sm:$0xff]   ;;  %v3169_v56 = vld [vmem:[#allocation2 + $0x1a0] ss:$16 sps:$4 sm:$0xff]  }
  0x39   :  { %1299 = vmatprep.subr.bf16.mxu0 %v3117_v20  ;;  %1463 = vmatprep.subr.bf16.mxu1 %v3119_v21  ;;  %v3170_v57 = vld [vmem:[#allocation2 + $0x1a8] ss:$16 sps:$4 sm:$0xff]   ;;  %v3171_v58 = vld [vmem:[#allocation2 + $0x1c4] ss:$16 sps:$4 sm:$0xff]   ;;  %v3173_v59 = vld [vmem:[#allocation2 + $0x1cc] ss:$16 sps:$4 sm:$0xff]  }
  0x3a   :  { %1321 = vmatprep.mubr.bf16.mxu0 %v81_v48  ;;  %1485 = vmatprep.mubr.bf16.mxu1 %v81_v48  ;;  %v3175_v60 = vld [vmem:[#allocation2 + $0x1c0] ss:$16 sps:$4 sm:$0xff]   ;;  %v3176_v61 = vld [vmem:[#allocation2 + $0x1c8] ss:$16 sps:$4 sm:$0xff]   ;;  %v3177_v62 = vld [vmem:[#allocation2 + $0x1e4] ss:$16 sps:$4 sm:$0xff]  }
  0x3b   :  { %v3179_v63 = vld [vmem:[#allocation2 + $0x1ec] ss:$16 sps:$4 sm:$0xff]   ;;  %v3181_v0 = vld [vmem:[#allocation2 + $0x1e0] ss:$16 sps:$4 sm:$0xff]   ;;  %v3182_v1 = vld [vmem:[#allocation2 + $0x1e8] ss:$16 sps:$4 sm:$0xff]  }
  0x3c   :  { %1300 = vmatpush1.bf16.msra.mxu0 %v3121_v22  ;;  %1464 = vmatpush1.bf16.msra.mxu1 %v3122_v23  ;;  %v73_v2 = vld [vmem:[%s4051_s0] sm:$0xff]  ;;  %v3188_v4 = vld [vmem:[#allocation2 + $0x20c] ss:$16 sps:$4 sm:$0xff]   ;;  %v3186_v7 = vld [vmem:[#allocation2 + $0x208] ss:$16 sps:$4 sm:$0xff]   ;;  %vm3573_vm1 = vmmov 0  }
  0x3d   :  { %1301 = vmatprep.subr.bf16.mxu0 %v3123_v24  ;;  %1465 = vmatprep.subr.bf16.mxu1 %v3125_v25  ;;  %v3185_v3 = vld [vmem:[#allocation2 + $0x204] ss:$16 sps:$4 sm:$0xff]   ;;  %v80_v5 = vpack.c.bf16 %v73_v2, %v73_v2  ;;  %v3183_v6 = vld [vmem:[#allocation2 + $0x200] ss:$16 sps:$4 sm:$0xff]   ;;  %v3194_v9 = vld [vmem:[#allocation2 + $0x22c] ss:$16 sps:$4 sm:$0xff]  }
  0x3e   :  { %v3191_v8 = vld [vmem:[#allocation2 + $0x224] ss:$16 sps:$4 sm:$0xff]   ;;  %v3189_v10 = vld [vmem:[#allocation2 + $0x220] ss:$16 sps:$4 sm:$0xff]   ;;  %v3192_v11 = vld [vmem:[#allocation2 + $0x228] ss:$16 sps:$4 sm:$0xff]  }
  0x3f   :  { %v3197_v12 = vld [vmem:[#allocation2 + $0x244] ss:$16 sps:$4 sm:$0xff]   ;;  %v3200_v13 = vld [vmem:[#allocation2 + $0x24c] ss:$16 sps:$4 sm:$0xff]   ;;  %v3195_v14 = vld [vmem:[#allocation2 + $0x240] ss:$16 sps:$4 sm:$0xff]  }
  0x40   :  { %1302 = vmatpush1.bf16.msra.mxu0 %v3127_v26  ;;  %1466 = vmatpush1.bf16.msra.mxu1 %v3128_v27  ;;  %v3198_v15 = vld [vmem:[#allocation2 + $0x248] ss:$16 sps:$4 sm:$0xff]   ;;  %v3203_v16 = vld [vmem:[#allocation2 + $0x264] ss:$16 sps:$4 sm:$0xff]   ;;  %v3206_v17 = vld [vmem:[#allocation2 + $0x26c] ss:$16 sps:$4 sm:$0xff]  }
  0x41   :  { %1303 = vmatprep.subr.bf16.mxu0 %v3129_v28  ;;  %1467 = vmatprep.subr.bf16.mxu1 %v3131_v29  ;;  %v3201_v18 = vld [vmem:[#allocation2 + $0x260] ss:$16 sps:$4 sm:$0xff]   ;;  %v3204_v19 = vld [vmem:[#allocation2 + $0x268] ss:$16 sps:$4 sm:$0xff]   ;;  %v3209_v20 = vld [vmem:[#allocation2 + $0x284] ss:$16 sps:$4 sm:$0xff]  }
  0x42   :  { %v3212_v21 = vld [vmem:[#allocation2 + $0x28c] ss:$16 sps:$4 sm:$0xff]   ;;  %v3207_v22 = vld [vmem:[#allocation2 + $0x280] ss:$16 sps:$4 sm:$0xff]   ;;  %v3210_v23 = vld [vmem:[#allocation2 + $0x288] ss:$16 sps:$4 sm:$0xff]  }
  0x43   :  { %v3215_v24 = vld [vmem:[#allocation2 + $0x2a4] ss:$16 sps:$4 sm:$0xff]   ;;  %v3218_v25 = vld [vmem:[#allocation2 + $0x2ac] ss:$16 sps:$4 sm:$0xff]   ;;  %v3213_v26 = vld [vmem:[#allocation2 + $0x2a0] ss:$16 sps:$4 sm:$0xff]  }
  0x44   :  { %1304 = vmatpush1.bf16.msra.mxu0 %v3133_v30  ;;  %1468 = vmatpush1.bf16.msra.mxu1 %v3134_v31  ;;  %v3216_v27 = vld [vmem:[#allocation2 + $0x2a8] ss:$16 sps:$4 sm:$0xff]   ;;  %v3221_v28 = vld [vmem:[#allocation2 + $0x2c4] ss:$16 sps:$4 sm:$0xff]   ;;  %v3224_v29 = vld [vmem:[#allocation2 + $0x2cc] ss:$16 sps:$4 sm:$0xff]  }
  0x45   :  { %1305 = vmatprep.subr.bf16.mxu0 %v3135_v32  ;;  %1469 = vmatprep.subr.bf16.mxu1 %v3137_v33  ;;  %v76_v30 = vld [vmem:[%s4051_s0 + $0x18] sm:$0xff]  ;;  %v3219_v31 = vld [vmem:[#allocation2 + $0x2c0] ss:$16 sps:$4 sm:$0xff]   ;;  %v3245_v46 = vld [vmem:[#allocation2 + $0x344] ss:$16 sps:$4 sm:$0xff]  }
  0x46   :  { %v83_v32 = vpack.c.bf16 %v76_v30, %v76_v30  ;;  %v3222_v33 = vld [vmem:[#allocation2 + $0x2c8] ss:$16 sps:$4 sm:$0xff]   ;;  %v3243_v48 = vld [vmem:[#allocation2 + $0x340] ss:$16 sps:$4 sm:$0xff]   ;;  %v3275_v2 = vld [vmem:[#allocation2 + $0x3e4] ss:$16 sps:$4 sm:$0xff]  }
  0x47   :  { %v3311_v30 = vld [vmem:[#allocation2 + $0x4a4] ss:$16 sps:$4 sm:$0xff]  }
  0x48   :  { %1306 = vmatpush1.bf16.msra.mxu0 %v3139_v34  ;;  %1470 = vmatpush1.bf16.msra.mxu1 %v3140_v35  ;;  %v3227_v34 = vld [vmem:[#allocation2 + $0x2e4] ss:$16 sps:$4 sm:$0xff]   ;;  %v3230_v35 = vld [vmem:[#allocation2 + $0x2ec] ss:$16 sps:$4 sm:$0xff]  }
  0x49   :  { %1307 = vmatprep.subr.bf16.mxu0 %v3141_v36  ;;  %1471 = vmatprep.subr.bf16.mxu1 %v3143_v37  ;;  %v3225_v36 = vld [vmem:[#allocation2 + $0x2e0] ss:$16 sps:$4 sm:$0xff]   ;;  %v3228_v37 = vld [vmem:[#allocation2 + $0x2e8] ss:$16 sps:$4 sm:$0xff]  }
  0x4c   :  { %1308 = vmatpush1.bf16.msra.mxu0 %v3145_v38  ;;  %1472 = vmatpush1.bf16.msra.mxu1 %v3146_v39  ;;  %v3233_v38 = vld [vmem:[#allocation2 + $0x304] ss:$16 sps:$4 sm:$0xff]   ;;  %v3236_v39 = vld [vmem:[#allocation2 + $0x30c] ss:$16 sps:$4 sm:$0xff]  }
  0x4d   :  { %1309 = vmatprep.subr.bf16.mxu0 %v3147_v40  ;;  %1473 = vmatprep.subr.bf16.mxu1 %v3149_v41  ;;  %v3231_v40 = vld [vmem:[#allocation2 + $0x300] ss:$16 sps:$4 sm:$0xff]   ;;  %v3234_v41 = vld [vmem:[#allocation2 + $0x308] ss:$16 sps:$4 sm:$0xff]  }
  0x50   :  { %1310 = vmatpush1.bf16.msra.mxu0 %v3151_v42  ;;  %1474 = vmatpush1.bf16.msra.mxu1 %v3152_v43  ;;  %v3239_v42 = vld [vmem:[#allocation2 + $0x324] ss:$16 sps:$4 sm:$0xff]   ;;  %v3242_v43 = vld [vmem:[#allocation2 + $0x32c] ss:$16 sps:$4 sm:$0xff]  }
  0x51   :  { %1311 = vmatprep.subr.bf16.mxu0 %v3153_v44  ;;  %1475 = vmatprep.subr.bf16.mxu1 %v3155_v45  ;;  %v3237_v44 = vld [vmem:[#allocation2 + $0x320] ss:$16 sps:$4 sm:$0xff]   ;;  %v3240_v45 = vld [vmem:[#allocation2 + $0x328] ss:$16 sps:$4 sm:$0xff]  }
  0x54   :  { %1312 = vmatpush1.bf16.msra.mxu0 %v3157_v47  ;;  %1476 = vmatpush1.bf16.msra.mxu1 %v3158_v49  ;;  %v3248_v47 = vld [vmem:[#allocation2 + $0x34c] ss:$16 sps:$4 sm:$0xff]   ;;  %v3246_v49 = vld [vmem:[#allocation2 + $0x348] ss:$16 sps:$4 sm:$0xff]  }
  0x55   :  { %1313 = vmatprep.subr.bf16.mxu0 %v3159_v50  ;;  %1477 = vmatprep.subr.bf16.mxu1 %v3161_v51  ;;  %v3251_v50 = vld [vmem:[#allocation2 + $0x364] ss:$16 sps:$4 sm:$0xff]   ;;  %v3254_v51 = vld [vmem:[#allocation2 + $0x36c] ss:$16 sps:$4 sm:$0xff]  }
  0x58   :  { %1314 = vmatpush1.bf16.msra.mxu0 %v3163_v52  ;;  %1478 = vmatpush1.bf16.msra.mxu1 %v3164_v53  ;;  %v3249_v52 = vld [vmem:[#allocation2 + $0x360] ss:$16 sps:$4 sm:$0xff]   ;;  %v3252_v53 = vld [vmem:[#allocation2 + $0x368] ss:$16 sps:$4 sm:$0xff]  }
  0x59   :  { %1315 = vmatprep.subr.bf16.mxu0 %v3165_v54  ;;  %1479 = vmatprep.subr.bf16.mxu1 %v3167_v55  ;;  %v3257_v54 = vld [vmem:[#allocation2 + $0x384] ss:$16 sps:$4 sm:$0xff]   ;;  %v3260_v55 = vld [vmem:[#allocation2 + $0x38c] ss:$16 sps:$4 sm:$0xff]  }
  0x5c   :  { %1316 = vmatpush1.bf16.msra.mxu0 %v3169_v56  ;;  %1480 = vmatpush1.bf16.msra.mxu1 %v3170_v57  ;;  %v3255_v56 = vld [vmem:[#allocation2 + $0x380] ss:$16 sps:$4 sm:$0xff]   ;;  %v3258_v57 = vld [vmem:[#allocation2 + $0x388] ss:$16 sps:$4 sm:$0xff]  }
  0x5d   :  { %1317 = vmatprep.subr.bf16.mxu0 %v3171_v58  ;;  %1481 = vmatprep.subr.bf16.mxu1 %v3173_v59  ;;  %v3263_v58 = vld [vmem:[#allocation2 + $0x3a4] ss:$16 sps:$4 sm:$0xff]   ;;  %v3266_v59 = vld [vmem:[#allocation2 + $0x3ac] ss:$16 sps:$4 sm:$0xff]  }
  0x60   :  { %1318 = vmatpush1.bf16.msra.mxu0 %v3175_v60  ;;  %1482 = vmatpush1.bf16.msra.mxu1 %v3176_v61  ;;  %v3261_v60 = vld [vmem:[#allocation2 + $0x3a0] ss:$16 sps:$4 sm:$0xff]   ;;  %v3264_v61 = vld [vmem:[#allocation2 + $0x3a8] ss:$16 sps:$4 sm:$0xff]  }
  0x61   :  { %1319 = vmatprep.subr.bf16.mxu0 %v3177_v62  ;;  %1483 = vmatprep.subr.bf16.mxu1 %v3179_v63  ;;  %v3269_v62 = vld [vmem:[#allocation2 + $0x3c4] ss:$16 sps:$4 sm:$0xff]   ;;  %v3272_v63 = vld [vmem:[#allocation2 + $0x3cc] ss:$16 sps:$4 sm:$0xff]  }
  0x64   :  { %1320 = vmatpush1.bf16.msra.mxu0 %v3181_v0  ;;  %1484 = vmatpush1.bf16.msra.mxu1 %v3182_v1  ;;  %v3267_v0 = vld [vmem:[#allocation2 + $0x3c0] ss:$16 sps:$4 sm:$0xff]   ;;  %v3270_v1 = vld [vmem:[#allocation2 + $0x3c8] ss:$16 sps:$4 sm:$0xff]  }
  0x65   :  { %1330 = vmatprep.subr.bf16.mxu0 %v3185_v3  ;;  %1494 = vmatprep.subr.bf16.mxu1 %v3188_v4  ;;  %v3278_v3 = vld [vmem:[#allocation2 + $0x3ec] ss:$16 sps:$4 sm:$0xff]   ;;  %v3273_v4 = vld [vmem:[#allocation2 + $0x3e0] ss:$16 sps:$4 sm:$0xff]  }
  0x67   :  { %1322 = vmatmul.mubr.bf16.vlgmr.msra.gmra.mrb[0].mxu0 %v80_v5  ;;  %1486 = vmatmul.mubr.bf16.vlgmr.msra.gmra.mrb[0].mxu1 %v80_v5  ;;  %v3276_v5 = vld [vmem:[#allocation2 + $0x3e8] ss:$16 sps:$4 sm:$0xff]  }
  0x68   :  { %1331 = vmatpush1.bf16.msra.mxu0 %v3183_v6  ;;  %1495 = vmatpush1.bf16.msra.mxu1 %v3186_v7  ;;  %v3281_v6 = vld [vmem:[#allocation2 + $0x404] ss:$16 sps:$4 sm:$0xff]  }
  0x69   :  { %1332 = vmatprep.subr.bf16.mxu0 %v3191_v8  ;;  %1496 = vmatprep.subr.bf16.mxu1 %v3194_v9  ;;  %v75_v7 = vld [vmem:[%s4051_s0 + $0x10] sm:$0xff]  ;;  %v3284_v8 = vld [vmem:[#allocation2 + $0x40c] ss:$16 sps:$4 sm:$0xff]  }
  0x6a   :  { %1362 = vmatprep.mubr.bf16.mxu0 %v83_v32  ;;  %1526 = vmatprep.mubr.bf16.mxu1 %v83_v32  ;;  %v3279_v9 = vld [vmem:[#allocation2 + $0x400] ss:$16 sps:$4 sm:$0xff]  }
  0x6b   :  { %v3309_v32 = vld [vmem:[#allocation2 + $0x4a0] ss:$16 sps:$4 sm:$0xff]  }
  0x6c   :  { %1333 = vmatpush1.bf16.msra.mxu0 %v3189_v10  ;;  %1497 = vmatpush1.bf16.msra.mxu1 %v3192_v11  ;;  %v82_v10 = vpack.c.bf16 %v75_v7, %v75_v7  ;;  %v3282_v11 = vld [vmem:[#allocation2 + $0x408] ss:$16 sps:$4 sm:$0xff]   ;;  %v3374_v7 = vld [vmem:[#allocation2 + $0x5ec] ss:$16 sps:$4 sm:$0xff]  }
  0x6d   :  { %1334 = vmatprep.subr.bf16.mxu0 %v3197_v12  ;;  %1498 = vmatprep.subr.bf16.mxu1 %v3200_v13  ;;  %v3287_v12 = vld [vmem:[#allocation2 + $0x424] ss:$16 sps:$4 sm:$0xff]   ;;  %v3290_v13 = vld [vmem:[#allocation2 + $0x42c] ss:$16 sps:$4 sm:$0xff]  }
  0x70   :  { %1335 = vmatpush1.bf16.msra.mxu0 %v3195_v14  ;;  %1499 = vmatpush1.bf16.msra.mxu1 %v3198_v15  ;;  %v78_v14 = vld [vmem:[%s4051_s0 + $0x28] sm:$0xff] }
  0x71   :  { %1336 = vmatprep.subr.bf16.mxu0 %v3203_v16  ;;  %1500 = vmatprep.subr.bf16.mxu1 %v3206_v17  ;;  %v85_v15 = vpack.c.bf16 %v78_v14, %v78_v14  ;;  %v3285_v16 = vld [vmem:[#allocation2 + $0x420] ss:$16 sps:$4 sm:$0xff]   ;;  %v3288_v17 = vld [vmem:[#allocation2 + $0x428] ss:$16 sps:$4 sm:$0xff]  }
  0x72   :  { %v3375_v14 = vld [vmem:[#allocation2 + $0x600] ss:$16 sps:$4 sm:$0xff]  }
  0x74   :  { %1337 = vmatpush1.bf16.msra.mxu0 %v3201_v18  ;;  %1501 = vmatpush1.bf16.msra.mxu1 %v3204_v19  ;;  %v3293_v18 = vld [vmem:[#allocation2 + $0x444] ss:$16 sps:$4 sm:$0xff]   ;;  %v3296_v19 = vld [vmem:[#allocation2 + $0x44c] ss:$16 sps:$4 sm:$0xff]  }
  0x75   :  { %1338 = vmatprep.subr.bf16.mxu0 %v3209_v20  ;;  %1502 = vmatprep.subr.bf16.mxu1 %v3212_v21  ;;  %v3291_v20 = vld [vmem:[#allocation2 + $0x440] ss:$16 sps:$4 sm:$0xff]   ;;  %v3294_v21 = vld [vmem:[#allocation2 + $0x448] ss:$16 sps:$4 sm:$0xff]  }
  0x78   :  { %1339 = vmatpush1.bf16.msra.mxu0 %v3207_v22  ;;  %1503 = vmatpush1.bf16.msra.mxu1 %v3210_v23  ;;  %v3299_v22 = vld [vmem:[#allocation2 + $0x464] ss:$16 sps:$4 sm:$0xff]   ;;  %v3302_v23 = vld [vmem:[#allocation2 + $0x46c] ss:$16 sps:$4 sm:$0xff]  }
  0x79   :  { %1340 = vmatprep.subr.bf16.mxu0 %v3215_v24  ;;  %1504 = vmatprep.subr.bf16.mxu1 %v3218_v25  ;;  %v3297_v24 = vld [vmem:[#allocation2 + $0x460] ss:$16 sps:$4 sm:$0xff]   ;;  %v3300_v25 = vld [vmem:[#allocation2 + $0x468] ss:$16 sps:$4 sm:$0xff]  }
  0x7c   :  { %1341 = vmatpush1.bf16.msra.mxu0 %v3213_v26  ;;  %1505 = vmatpush1.bf16.msra.mxu1 %v3216_v27  ;;  %v3305_v26 = vld [vmem:[#allocation2 + $0x484] ss:$16 sps:$4 sm:$0xff]   ;;  %v3308_v27 = vld [vmem:[#allocation2 + $0x48c] ss:$16 sps:$4 sm:$0xff]  }
  0x7d   :  { %1342 = vmatprep.subr.bf16.mxu0 %v3221_v28  ;;  %1506 = vmatprep.subr.bf16.mxu1 %v3224_v29  ;;  %v3303_v28 = vld [vmem:[#allocation2 + $0x480] ss:$16 sps:$4 sm:$0xff]   ;;  %v3306_v29 = vld [vmem:[#allocation2 + $0x488] ss:$16 sps:$4 sm:$0xff]  }
  0x80   :  { %1343 = vmatpush1.bf16.msra.mxu0 %v3219_v31  ;;  %1507 = vmatpush1.bf16.msra.mxu1 %v3222_v33  ;;  %v3314_v31 = vld [vmem:[#allocation2 + $0x4ac] ss:$16 sps:$4 sm:$0xff]   ;;  %v3312_v33 = vld [vmem:[#allocation2 + $0x4a8] ss:$16 sps:$4 sm:$0xff]  }
  0x81   :  { %1344 = vmatprep.subr.bf16.mxu0 %v3227_v34  ;;  %1508 = vmatprep.subr.bf16.mxu1 %v3230_v35  ;;  %v3317_v34 = vld [vmem:[#allocation2 + $0x4c4] ss:$16 sps:$4 sm:$0xff]   ;;  %v3320_v35 = vld [vmem:[#allocation2 + $0x4cc] ss:$16 sps:$4 sm:$0xff]  }
  0x84   :  { %1345 = vmatpush1.bf16.msra.mxu0 %v3225_v36  ;;  %1509 = vmatpush1.bf16.msra.mxu1 %v3228_v37  ;;  %v3315_v36 = vld [vmem:[#allocation2 + $0x4c0] ss:$16 sps:$4 sm:$0xff]   ;;  %v3318_v37 = vld [vmem:[#allocation2 + $0x4c8] ss:$16 sps:$4 sm:$0xff]  }
  0x85   :  { %1346 = vmatprep.subr.bf16.mxu0 %v3233_v38  ;;  %1510 = vmatprep.subr.bf16.mxu1 %v3236_v39  ;;  %v3323_v38 = vld [vmem:[#allocation2 + $0x4e4] ss:$16 sps:$4 sm:$0xff]   ;;  %v3326_v39 = vld [vmem:[#allocation2 + $0x4ec] ss:$16 sps:$4 sm:$0xff]  }
  0x88   :  { %1347 = vmatpush1.bf16.msra.mxu0 %v3231_v40  ;;  %1511 = vmatpush1.bf16.msra.mxu1 %v3234_v41  ;;  %v3321_v40 = vld [vmem:[#allocation2 + $0x4e0] ss:$16 sps:$4 sm:$0xff]   ;;  %v3324_v41 = vld [vmem:[#allocation2 + $0x4e8] ss:$16 sps:$4 sm:$0xff]  }
  0x89   :  { %1348 = vmatprep.subr.bf16.mxu0 %v3239_v42  ;;  %1512 = vmatprep.subr.bf16.mxu1 %v3242_v43  ;;  %v3329_v42 = vld [vmem:[#allocation2 + $0x504] ss:$16 sps:$4 sm:$0xff]   ;;  %v3332_v43 = vld [vmem:[#allocation2 + $0x50c] ss:$16 sps:$4 sm:$0xff]  }
  0x8c   :  { %1349 = vmatpush1.bf16.msra.mxu0 %v3237_v44  ;;  %1513 = vmatpush1.bf16.msra.mxu1 %v3240_v45  ;;  %v3327_v44 = vld [vmem:[#allocation2 + $0x500] ss:$16 sps:$4 sm:$0xff]   ;;  %v3330_v45 = vld [vmem:[#allocation2 + $0x508] ss:$16 sps:$4 sm:$0xff]  }
  0x8d   :  { %1350 = vmatprep.subr.bf16.mxu0 %v3245_v46  ;;  %1514 = vmatprep.subr.bf16.mxu1 %v3248_v47  ;;  %v3335_v46 = vld [vmem:[#allocation2 + $0x524] ss:$16 sps:$4 sm:$0xff]   ;;  %v3338_v47 = vld [vmem:[#allocation2 + $0x52c] ss:$16 sps:$4 sm:$0xff]  }
  0x90   :  { %1351 = vmatpush1.bf16.msra.mxu0 %v3243_v48  ;;  %1515 = vmatpush1.bf16.msra.mxu1 %v3246_v49  ;;  %v3333_v48 = vld [vmem:[#allocation2 + $0x520] ss:$16 sps:$4 sm:$0xff]   ;;  %v3336_v49 = vld [vmem:[#allocation2 + $0x528] ss:$16 sps:$4 sm:$0xff]  }
  0x91   :  { %1352 = vmatprep.subr.bf16.mxu0 %v3251_v50  ;;  %1516 = vmatprep.subr.bf16.mxu1 %v3254_v51  ;;  %v3341_v50 = vld [vmem:[#allocation2 + $0x544] ss:$16 sps:$4 sm:$0xff]   ;;  %v3344_v51 = vld [vmem:[#allocation2 + $0x54c] ss:$16 sps:$4 sm:$0xff]  }
  0x94   :  { %1353 = vmatpush1.bf16.msra.mxu0 %v3249_v52  ;;  %1517 = vmatpush1.bf16.msra.mxu1 %v3252_v53  ;;  %v3339_v52 = vld [vmem:[#allocation2 + $0x540] ss:$16 sps:$4 sm:$0xff]   ;;  %v3342_v53 = vld [vmem:[#allocation2 + $0x548] ss:$16 sps:$4 sm:$0xff]  }
  0x95   :  { %1354 = vmatprep.subr.bf16.mxu0 %v3257_v54  ;;  %1518 = vmatprep.subr.bf16.mxu1 %v3260_v55  ;;  %v3347_v54 = vld [vmem:[#allocation2 + $0x564] ss:$16 sps:$4 sm:$0xff]   ;;  %v3350_v55 = vld [vmem:[#allocation2 + $0x56c] ss:$16 sps:$4 sm:$0xff]  }
  0x98   :  { %1355 = vmatpush1.bf16.msra.mxu0 %v3255_v56  ;;  %1519 = vmatpush1.bf16.msra.mxu1 %v3258_v57  ;;  %v3345_v56 = vld [vmem:[#allocation2 + $0x560] ss:$16 sps:$4 sm:$0xff]   ;;  %v3348_v57 = vld [vmem:[#allocation2 + $0x568] ss:$16 sps:$4 sm:$0xff]  }
  0x99   :  { %1356 = vmatprep.subr.bf16.mxu0 %v3263_v58  ;;  %1520 = vmatprep.subr.bf16.mxu1 %v3266_v59  ;;  %v3353_v58 = vld [vmem:[#allocation2 + $0x584] ss:$16 sps:$4 sm:$0xff]   ;;  %v3356_v59 = vld [vmem:[#allocation2 + $0x58c] ss:$16 sps:$4 sm:$0xff]  }
  0x9c   :  { %1357 = vmatpush1.bf16.msra.mxu0 %v3261_v60  ;;  %1521 = vmatpush1.bf16.msra.mxu1 %v3264_v61  ;;  %v3351_v60 = vld [vmem:[#allocation2 + $0x580] ss:$16 sps:$4 sm:$0xff]   ;;  %v3354_v61 = vld [vmem:[#allocation2 + $0x588] ss:$16 sps:$4 sm:$0xff]  }
  0x9d   :  { %1358 = vmatprep.subr.bf16.mxu0 %v3269_v62  ;;  %1522 = vmatprep.subr.bf16.mxu1 %v3272_v63  ;;  %v3359_v62 = vld [vmem:[#allocation2 + $0x5a4] ss:$16 sps:$4 sm:$0xff]   ;;  %v3362_v63 = vld [vmem:[#allocation2 + $0x5ac] ss:$16 sps:$4 sm:$0xff]  }
  0xa0   :  { %1359 = vmatpush1.bf16.msra.mxu0 %v3267_v0  ;;  %1523 = vmatpush1.bf16.msra.mxu1 %v3270_v1  ;;  %v3357_v0 = vld [vmem:[#allocation2 + $0x5a0] ss:$16 sps:$4 sm:$0xff]   ;;  %v3360_v1 = vld [vmem:[#allocation2 + $0x5a8] ss:$16 sps:$4 sm:$0xff]  }
  0xa1   :  { %1360 = vmatprep.subr.bf16.mxu0 %v3275_v2  ;;  %1524 = vmatprep.subr.bf16.mxu1 %v3278_v3  ;;  %v3365_v2 = vld [vmem:[#allocation2 + $0x5c4] ss:$16 sps:$4 sm:$0xff]   ;;  %v3368_v3 = vld [vmem:[#allocation2 + $0x5cc] ss:$16 sps:$4 sm:$0xff]  }
  0xa4   :  { %1361 = vmatpush1.bf16.msra.mxu0 %v3273_v4  ;;  %1525 = vmatpush1.bf16.msra.mxu1 %v3276_v5  ;;  %v3363_v4 = vld [vmem:[#allocation2 + $0x5c0] ss:$16 sps:$4 sm:$0xff]   ;;  %v3366_v5 = vld [vmem:[#allocation2 + $0x5c8] ss:$16 sps:$4 sm:$0xff]  }
  0xa5   :  { %1371 = vmatprep.subr.bf16.mxu0 %v3281_v6  ;;  %1535 = vmatprep.subr.bf16.mxu1 %v3284_v8  ;;  %v3371_v6 = vld [vmem:[#allocation2 + $0x5e4] ss:$16 sps:$4 sm:$0xff]   ;;  %v3369_v8 = vld [vmem:[#allocation2 + $0x5e0] ss:$16 sps:$4 sm:$0xff]  }
  0xa7   :  { %1363 = vmatmul.mubr.bf16.vlgmr.msra.gmra.mrb[0].mxu0 %v82_v10  ;;  %1527 = vmatmul.mubr.bf16.vlgmr.msra.gmra.mrb[0].mxu1 %v82_v10  ;;  %v77_v10 = vld [vmem:[%s4051_s0 + $0x20] sm:$0xff] }
  0xa8   :  { %1372 = vmatpush1.bf16.msra.mxu0 %v3279_v9  ;;  %1536 = vmatpush1.bf16.msra.mxu1 %v3282_v11  ;;  %v3372_v9 = vld [vmem:[#allocation2 + $0x5e8] ss:$16 sps:$4 sm:$0xff]   ;;  %v3377_v11 = vld [vmem:[#allocation2 + $0x604] ss:$16 sps:$4 sm:$0xff]  }
  0xa9   :  { %1373 = vmatprep.subr.bf16.mxu0 %v3287_v12  ;;  %1537 = vmatprep.subr.bf16.mxu1 %v3290_v13  ;;  %v3380_v12 = vld [vmem:[#allocation2 + $0x60c] ss:$16 sps:$4 sm:$0xff]   ;;  %v84_v13 = vpack.c.bf16 %v77_v10, %v77_v10 }
  0xaa   :  { %1403 = vmatprep.mubr.bf16.mxu0 %v85_v15  ;;  %1567 = vmatprep.mubr.bf16.mxu1 %v85_v15  ;;  %v3378_v15 = vld [vmem:[#allocation2 + $0x608] ss:$16 sps:$4 sm:$0xff]  }
  0xac   :  { %1374 = vmatpush1.bf16.msra.mxu0 %v3285_v16  ;;  %1538 = vmatpush1.bf16.msra.mxu1 %v3288_v17  ;;  %v3383_v16 = vld [vmem:[%s4054_s3 + $0x4] ss:$8 sps:$4 sm:$0xff]   ;;  %v3571_v17 = vmov 0  }
  0xad   :  { %1375 = vmatprep.subr.bf16.mxu0 %v3293_v18  ;;  %1539 = vmatprep.subr.bf16.mxu1 %v3296_v19  ;;  %v79_v18 = vld [vmem:[%s4051_s0 + $0x30] sm:$0xff] }
  0xae   :  { %v86_v19 = vpack.c.bf16 %v79_v18, %v79_v18 }
  0xb0   :  { %1376 = vmatpush1.bf16.msra.mxu0 %v3291_v20  ;;  %1540 = vmatpush1.bf16.msra.mxu1 %v3294_v21  ;;  %v3381_v20 = vld [vmem:[%s4054_s3] ss:$8 sps:$4 sm:$0xff]   ;;  %v3386_v21 = vld [vmem:[%s4054_s3 + $0x14] ss:$8 sps:$4 sm:$0xff]  }
  0xb1   :  { %1377 = vmatprep.subr.bf16.mxu0 %v3299_v22  ;;  %1541 = vmatprep.subr.bf16.mxu1 %v3302_v23  ;;  %v3384_v22 = vld [vmem:[%s4054_s3 + $0x10] ss:$8 sps:$4 sm:$0xff]   ;;  %v3389_v23 = vld [vmem:[%s4054_s3 + $0x24] ss:$8 sps:$4 sm:$0xff]  }
  0xb4   :  { %1378 = vmatpush1.bf16.msra.mxu0 %v3297_v24  ;;  %1542 = vmatpush1.bf16.msra.mxu1 %v3300_v25  ;;  %v3387_v24 = vld [vmem:[%s4054_s3 + $0x20] ss:$8 sps:$4 sm:$0xff]   ;;  %v3392_v25 = vld [vmem:[%s4054_s3 + $0x34] ss:$8 sps:$4 sm:$0xff]  }
  0xb5   :  { %1379 = vmatprep.subr.bf16.mxu0 %v3305_v26  ;;  %1543 = vmatprep.subr.bf16.mxu1 %v3308_v27  ;;  %v3390_v26 = vld [vmem:[%s4054_s3 + $0x30] ss:$8 sps:$4 sm:$0xff]   ;;  %v3395_v27 = vld [vmem:[%s4054_s3 + $0x44] ss:$8 sps:$4 sm:$0xff]  }
  0xb8   :  { %1380 = vmatpush1.bf16.msra.mxu0 %v3303_v28  ;;  %1544 = vmatpush1.bf16.msra.mxu1 %v3306_v29  ;;  %v3393_v28 = vld [vmem:[%s4054_s3 + $0x40] ss:$8 sps:$4 sm:$0xff]   ;;  %v3398_v29 = vld [vmem:[%s4054_s3 + $0x54] ss:$8 sps:$4 sm:$0xff]  }
  0xb9   :  { %1381 = vmatprep.subr.bf16.mxu0 %v3311_v30  ;;  %1545 = vmatprep.subr.bf16.mxu1 %v3314_v31  ;;  %v3396_v30 = vld [vmem:[%s4054_s3 + $0x50] ss:$8 sps:$4 sm:$0xff]   ;;  %v3401_v31 = vld [vmem:[%s4054_s3 + $0x64] ss:$8 sps:$4 sm:$0xff]  }
  0xbc   :  { %1382 = vmatpush1.bf16.msra.mxu0 %v3309_v32  ;;  %1546 = vmatpush1.bf16.msra.mxu1 %v3312_v33  ;;  %v3399_v32 = vld [vmem:[%s4054_s3 + $0x60] ss:$8 sps:$4 sm:$0xff]   ;;  %v3404_v33 = vld [vmem:[%s4054_s3 + $0x74] ss:$8 sps:$4 sm:$0xff]  }
  0xbd   :  { %1383 = vmatprep.subr.bf16.mxu0 %v3317_v34  ;;  %1547 = vmatprep.subr.bf16.mxu1 %v3320_v35  ;;  %v3402_v34 = vld [vmem:[%s4054_s3 + $0x70] ss:$8 sps:$4 sm:$0xff]   ;;  %v3407_v35 = vld [vmem:[%s4054_s3 + $0x84] ss:$8 sps:$4 sm:$0xff]  }
  0xc0   :  { %1384 = vmatpush1.bf16.msra.mxu0 %v3315_v36  ;;  %1548 = vmatpush1.bf16.msra.mxu1 %v3318_v37  ;;  %v3405_v36 = vld [vmem:[%s4054_s3 + $0x80] ss:$8 sps:$4 sm:$0xff]   ;;  %v3410_v37 = vld [vmem:[%s4054_s3 + $0x94] ss:$8 sps:$4 sm:$0xff]  }
  0xc1   :  { %1385 = vmatprep.subr.bf16.mxu0 %v3323_v38  ;;  %1549 = vmatprep.subr.bf16.mxu1 %v3326_v39  ;;  %v3408_v38 = vld [vmem:[%s4054_s3 + $0x90] ss:$8 sps:$4 sm:$0xff]   ;;  %v3413_v39 = vld [vmem:[%s4054_s3 + $0xa4] ss:$8 sps:$4 sm:$0xff]  }
  0xc4   :  { %1386 = vmatpush1.bf16.msra.mxu0 %v3321_v40  ;;  %1550 = vmatpush1.bf16.msra.mxu1 %v3324_v41  ;;  %v3411_v40 = vld [vmem:[%s4054_s3 + $0xa0] ss:$8 sps:$4 sm:$0xff]   ;;  %v3416_v41 = vld [vmem:[%s4054_s3 + $0xb4] ss:$8 sps:$4 sm:$0xff]  }
  0xc5   :  { %1387 = vmatprep.subr.bf16.mxu0 %v3329_v42  ;;  %1551 = vmatprep.subr.bf16.mxu1 %v3332_v43  ;;  %v3414_v42 = vld [vmem:[%s4054_s3 + $0xb0] ss:$8 sps:$4 sm:$0xff]   ;;  %v3419_v43 = vld [vmem:[%s4054_s3 + $0xc4] ss:$8 sps:$4 sm:$0xff]  }
  0xc8   :  { %1388 = vmatpush1.bf16.msra.mxu0 %v3327_v44  ;;  %1552 = vmatpush1.bf16.msra.mxu1 %v3330_v45  ;;  %v3417_v44 = vld [vmem:[%s4054_s3 + $0xc0] ss:$8 sps:$4 sm:$0xff]   ;;  %v3422_v45 = vld [vmem:[%s4054_s3 + $0xd4] ss:$8 sps:$4 sm:$0xff]  }
  0xc9   :  { %1389 = vmatprep.subr.bf16.mxu0 %v3335_v46  ;;  %1553 = vmatprep.subr.bf16.mxu1 %v3338_v47  ;;  %v3420_v46 = vld [vmem:[%s4054_s3 + $0xd0] ss:$8 sps:$4 sm:$0xff]   ;;  %v3425_v47 = vld [vmem:[%s4054_s3 + $0xe4] ss:$8 sps:$4 sm:$0xff]  }
  0xcc   :  { %1390 = vmatpush1.bf16.msra.mxu0 %v3333_v48  ;;  %1554 = vmatpush1.bf16.msra.mxu1 %v3336_v49  ;;  %v3423_v48 = vld [vmem:[%s4054_s3 + $0xe0] ss:$8 sps:$4 sm:$0xff]   ;;  %v3428_v49 = vld [vmem:[%s4054_s3 + $0xf4] ss:$8 sps:$4 sm:$0xff]  }
  0xcd   :  { %1391 = vmatprep.subr.bf16.mxu0 %v3341_v50  ;;  %1555 = vmatprep.subr.bf16.mxu1 %v3344_v51  ;;  %v3426_v50 = vld [vmem:[%s4054_s3 + $0xf0] ss:$8 sps:$4 sm:$0xff]   ;;  %v3431_v51 = vld [vmem:[%s4054_s3 + $0x104] ss:$8 sps:$4 sm:$0xff]  }
  0xd0   :  { %1392 = vmatpush1.bf16.msra.mxu0 %v3339_v52  ;;  %1556 = vmatpush1.bf16.msra.mxu1 %v3342_v53  ;;  %v3477_v52 = vld [vmem:[%s4056_s5 + $0x40] sm:$0xff]  }
  0xd1   :  { %1393 = vmatprep.subr.bf16.mxu0 %v3347_v54  ;;  %1557 = vmatprep.subr.bf16.mxu1 %v3350_v55  ;;  %v3478_v53 = vld [vmem:[%s4056_s5] sm:$0xff]   ;;  %v3479_v54 = vld [vmem:[%s4056_s5 + $0x48] sm:$0xff]  }
  0xd2   :  { %v3480_v55 = vld [vmem:[%s4056_s5 + $0x8] sm:$0xff]  }
  0xd4   :  { %1394 = vmatpush1.bf16.msra.mxu0 %v3345_v56  ;;  %1558 = vmatpush1.bf16.msra.mxu1 %v3348_v57  ;;  %v3481_v56 = vld [vmem:[%s4056_s5 + $0x50] sm:$0xff]  }
  0xd5   :  { %1395 = vmatprep.subr.bf16.mxu0 %v3353_v58  ;;  %1559 = vmatprep.subr.bf16.mxu1 %v3356_v59  ;;  %v3482_v57 = vld [vmem:[%s4056_s5 + $0x10] sm:$0xff]   ;;  %v3483_v58 = vld [vmem:[%s4056_s5 + $0x58] sm:$0xff]  }
  0xd6   :  { %v3484_v59 = vld [vmem:[%s4056_s5 + $0x18] sm:$0xff]  }
  0xd8   :  { %1396 = vmatpush1.bf16.msra.mxu0 %v3351_v60  ;;  %1560 = vmatpush1.bf16.msra.mxu1 %v3354_v61  ;;  %v3485_v60 = vld [vmem:[%s4056_s5 + $0x60] sm:$0xff]  }
  0xd9   :  { %1397 = vmatprep.subr.bf16.mxu0 %v3359_v62  ;;  %1561 = vmatprep.subr.bf16.mxu1 %v3362_v63  ;;  %v3486_v61 = vld [vmem:[%s4056_s5 + $0x20] sm:$0xff]   ;;  %v3487_v62 = vld [vmem:[%s4056_s5 + $0x68] sm:$0xff]  }
  0xda   :  { %v3488_v63 = vld [vmem:[%s4056_s5 + $0x28] sm:$0xff]  }
  0xdc   :  { %1398 = vmatpush1.bf16.msra.mxu0 %v3357_v0  ;;  %1562 = vmatpush1.bf16.msra.mxu1 %v3360_v1  ;;  %v285_v0 = vlaneseq }
  0xdd   :  { %1399 = vmatprep.subr.bf16.mxu0 %v3365_v2  ;;  %1563 = vmatprep.subr.bf16.mxu1 %v3368_v3  ;;  %v3830_v3 = vld [vmem:[%s4053_s2] sm:$0xf] }
  0xde   :  { %v3824_v1 = vshrl.u32 %v285_v0, 7  ;;  %v3491_v0 = vld [vmem:[%s4056_s5 + $0x78] sm:$0xff]  }
  0xe0   :  { %1400 = vmatpush1.bf16.msra.mxu0 %v3363_v4  ;;  %1564 = vmatpush1.bf16.msra.mxu1 %v3366_v5  ;;  %v287_v2 = vsub.s32 0, %v3824_v1  ;;  %v291_v4 = vsub.s32 1, %v3824_v1  ;;  %v299_v5 = vsub.s32 3, %v3824_v1 }
  0xe1   :  { %1401 = vmatprep.subr.bf16.mxu0 %v3371_v6  ;;  %1565 = vmatprep.subr.bf16.mxu1 %v3374_v7 }
  0xe2   :  { %v288_v6 = vrot.slane %v3830_v3, %v287_v2  ;;  %v292_v7 = vrot.slane %v3830_v3, %v291_v4 }
  0xe4   :  { %1402 = vmatpush1.bf16.msra.mxu0 %v3369_v8  ;;  %1566 = vmatpush1.bf16.msra.mxu1 %v3372_v9  ;;  %v300_v8 = vrot.slane %v3830_v3, %v299_v5  ;;  %v3572_v5 = vmov 0.0  }
  0xe5   :  { %1412 = vmatprep.subr.bf16.mxu0 %v3377_v11  ;;  %1576 = vmatprep.subr.bf16.mxu1 %v3380_v12 }
  0xe7   :  { %1404 = vmatmul.mubr.bf16.vlgmr.msra.gmra.mrb[0].mxu0 %v84_v13  ;;  %1568 = vmatmul.mubr.bf16.vlgmr.msra.gmra.mrb[0].mxu1 %v84_v13 }
  0xe8   :  { %1413 = vmatpush1.bf16.msra.mxu0 %v3375_v14  ;;  %1577 = vmatpush1.bf16.msra.mxu1 %v3378_v15 }
  0xe9   :  { %1444 = vmatprep.mubr.bf16.mxu0 %v3571_v17  ;;  %1608 = vmatprep.mubr.bf16.mxu1 %v3571_v17 }
  0xea   :  { %2021 = vmatprep.subr.bf16.mxu0 %v3383_v16  ;;  %2935 = vmatprep.subr.bf16.mxu1 %v3477_v52  ;;  %v3470_v52 = vld [vmem:[%s4054_s3 + $0x1d4] ss:$8 sps:$4 sm:$0xff]  }
  0xf3   :  { %2825 = vmatmul.mubr.msk.bf16.vlgmr.msra.gmra.mrb[0].mxu0 %vm1285_vm0, %v86_v19  ;;  %2826 = vmatmul.mubr.msk.bf16.vlgmr.msra.gmra.mrb[0].mxu1 %vm1285_vm0, %v86_v19 }
  0xf4   :  { %2022 = vmatpush1.bf16.msra.mxu0 %v3381_v20  ;;  %2936 = vmatpush3.bf16.msra.mxu1 %v3478_v53  ;;  %v3468_v53 = vld [vmem:[%s4054_s3 + $0x1d0] ss:$8 sps:$4 sm:$0xff]  }
  0xf5   :  { %2023 = vmatprep.subr.bf16.mxu0 %v3386_v21  ;;  %2937 = vmatprep.subr.bf16.mxu1 %v3479_v54 }
  0xf8   :  { %2024 = vmatpush1.bf16.msra.mxu0 %v3384_v22  ;;  %2938 = vmatpush3.bf16.msra.mxu1 %v3480_v55  ;;  %v3473_v55 = vld [vmem:[%s4054_s3 + $0x1e4] ss:$8 sps:$4 sm:$0xff]  }
  0xf9   :  { %2025 = vmatprep.subr.bf16.mxu0 %v3389_v23  ;;  %2939 = vmatprep.subr.bf16.mxu1 %v3481_v56  ;;  %v3471_v56 = vld [vmem:[%s4054_s3 + $0x1e0] ss:$8 sps:$4 sm:$0xff]  }
  0xfc   :  { %2026 = vmatpush1.bf16.msra.mxu0 %v3387_v24  ;;  %2940 = vmatpush3.bf16.msra.mxu1 %v3482_v57  ;;  %v3429_v24 = vld [vmem:[%s4054_s3 + $0x100] ss:$8 sps:$4 sm:$0xff]  }
  0xfd   :  { %2027 = vmatprep.subr.bf16.mxu0 %v3392_v25  ;;  %2941 = vmatprep.subr.bf16.mxu1 %v3483_v58  ;;  %v3476_v58 = vld [vmem:[%s4054_s3 + $0x1f4] ss:$8 sps:$4 sm:$0xff]  }
 0x100   :  { %2028 = vmatpush1.bf16.msra.mxu0 %v3390_v26  ;;  %2942 = vmatpush3.bf16.msra.mxu1 %v3484_v59  ;;  %v3434_v26 = vld [vmem:[%s4054_s3 + $0x114] ss:$8 sps:$4 sm:$0xff]   ;;  %v3474_v59 = vld [vmem:[%s4054_s3 + $0x1f0] ss:$8 sps:$4 sm:$0xff]  }
 0x101   :  { %2029 = vmatprep.subr.bf16.mxu0 %v3395_v27  ;;  %2943 = vmatprep.subr.bf16.mxu1 %v3485_v60 }
 0x104   :  { %2030 = vmatpush1.bf16.msra.mxu0 %v3393_v28  ;;  %2944 = vmatpush3.bf16.msra.mxu1 %v3486_v61  ;;  %v3432_v28 = vld [vmem:[%s4054_s3 + $0x110] ss:$8 sps:$4 sm:$0xff]  }
 0x105   :  { %2031 = vmatprep.subr.bf16.mxu0 %v3398_v29  ;;  %2945 = vmatprep.subr.bf16.mxu1 %v3487_v62  ;;  %v3437_v29 = vld [vmem:[%s4054_s3 + $0x124] ss:$8 sps:$4 sm:$0xff]   ;;  %v3489_v62 = vld [vmem:[%s4056_s5 + $0x70] sm:$0xff]  }
 0x108   :  { %2032 = vmatpush1.bf16.msra.mxu0 %v3396_v30  ;;  %2946 = vmatpush3.bf16.msra.mxu1 %v3488_v63  ;;  %v3435_v30 = vld [vmem:[%s4054_s3 + $0x120] ss:$8 sps:$4 sm:$0xff]   ;;  %v3490_v63 = vld [vmem:[%s4056_s5 + $0x30] sm:$0xff]  }
 0x109   :  { %2033 = vmatprep.subr.bf16.mxu0 %v3401_v31  ;;  %v3440_v31 = vld [vmem:[%s4054_s3 + $0x134] ss:$8 sps:$4 sm:$0xff]   ;;  %2947 = vmatprep.subr.bf16.mxu1 %v3489_v62 }
 0x10c   :  { %2034 = vmatpush1.bf16.msra.mxu0 %v3399_v32  ;;  %v3438_v32 = vld [vmem:[%s4054_s3 + $0x130] ss:$8 sps:$4 sm:$0xff]   ;;  %2948 = vmatpush3.bf16.msra.mxu1 %v3490_v63 }
 0x10d   :  { %2035 = vmatprep.subr.bf16.mxu0 %v3404_v33  ;;  %v3443_v33 = vld [vmem:[%s4054_s3 + $0x144] ss:$8 sps:$4 sm:$0xff]   ;;  %2949 = vmatprep.subr.bf16.mxu1 %v3491_v0 }
 0x110   :  { %2036 = vmatpush1.bf16.msra.mxu0 %v3402_v34  ;;  %v3441_v34 = vld [vmem:[%s4054_s3 + $0x140] ss:$8 sps:$4 sm:$0xff]  }
 0x111   :  { %2037 = vmatprep.subr.bf16.mxu0 %v3407_v35  ;;  %v3446_v35 = vld [vmem:[%s4054_s3 + $0x154] ss:$8 sps:$4 sm:$0xff]  }
 0x114   :  { %2038 = vmatpush1.bf16.msra.mxu0 %v3405_v36  ;;  %v3444_v36 = vld [vmem:[%s4054_s3 + $0x150] ss:$8 sps:$4 sm:$0xff]  }
 0x115   :  { %2039 = vmatprep.subr.bf16.mxu0 %v3410_v37  ;;  %v3449_v37 = vld [vmem:[%s4054_s3 + $0x164] ss:$8 sps:$4 sm:$0xff]  }
 0x118   :  { %2040 = vmatpush1.bf16.msra.mxu0 %v3408_v38  ;;  %v3447_v38 = vld [vmem:[%s4054_s3 + $0x160] ss:$8 sps:$4 sm:$0xff]  }
 0x119   :  { %2041 = vmatprep.subr.bf16.mxu0 %v3413_v39  ;;  %v3452_v39 = vld [vmem:[%s4054_s3 + $0x174] ss:$8 sps:$4 sm:$0xff]  }
 0x11c   :  { %2042 = vmatpush1.bf16.msra.mxu0 %v3411_v40  ;;  %v3450_v40 = vld [vmem:[%s4054_s3 + $0x170] ss:$8 sps:$4 sm:$0xff]  }
 0x11d   :  { %2043 = vmatprep.subr.bf16.mxu0 %v3416_v41  ;;  %v3455_v41 = vld [vmem:[%s4054_s3 + $0x184] ss:$8 sps:$4 sm:$0xff]  }
 0x120   :  { %2044 = vmatpush1.bf16.msra.mxu0 %v3414_v42  ;;  %v3453_v42 = vld [vmem:[%s4054_s3 + $0x180] ss:$8 sps:$4 sm:$0xff]  }
 0x121   :  { %2045 = vmatprep.subr.bf16.mxu0 %v3419_v43  ;;  %v3458_v43 = vld [vmem:[%s4054_s3 + $0x194] ss:$8 sps:$4 sm:$0xff]  }
 0x124   :  { %2046 = vmatpush1.bf16.msra.mxu0 %v3417_v44  ;;  %v3456_v44 = vld [vmem:[%s4054_s3 + $0x190] ss:$8 sps:$4 sm:$0xff]  }
 0x125   :  { %2047 = vmatprep.subr.bf16.mxu0 %v3422_v45  ;;  %v3461_v45 = vld [vmem:[%s4054_s3 + $0x1a4] ss:$8 sps:$4 sm:$0xff]  }
 0x128   :  { %2048 = vmatpush1.bf16.msra.mxu0 %v3420_v46  ;;  %v3459_v46 = vld [vmem:[%s4054_s3 + $0x1a0] ss:$8 sps:$4 sm:$0xff]  }
 0x129   :  { %2049 = vmatprep.subr.bf16.mxu0 %v3425_v47  ;;  %v3464_v47 = vld [vmem:[%s4054_s3 + $0x1b4] ss:$8 sps:$4 sm:$0xff]  }
 0x12c   :  { %2050 = vmatpush1.bf16.msra.mxu0 %v3423_v48  ;;  %v3462_v48 = vld [vmem:[%s4054_s3 + $0x1b0] ss:$8 sps:$4 sm:$0xff]  }
 0x12d   :  { %2051 = vmatprep.subr.bf16.mxu0 %v3428_v49  ;;  %v3467_v49 = vld [vmem:[%s4054_s3 + $0x1c4] ss:$8 sps:$4 sm:$0xff]  }
 0x130   :  { %2052 = vmatpush1.bf16.msra.mxu0 %v3426_v50  ;;  %v3465_v50 = vld [vmem:[%s4054_s3 + $0x1c0] ss:$8 sps:$4 sm:$0xff]  }
 0x131   :  { %2062 = vmatprep.subr.bf16.mxu0 %v3431_v51  ;;  %v295_v51 = vsub.s32 2, %v3824_v1  ;;  %v3494_v1 = vld [vmem:[%s4058_s7 + $0x8] sm:$0xff]  }
 0x133   :  { %v296_v54 = vrot.slane %v3830_v3, %v295_v51  ;;  %v3492_v3 = vld [vmem:[%s4056_s5 + $0x38] sm:$0xff]   ;;  %v3511_v51 = vld [vmem:[#allocation4 + $0x10] sm:$0xff]  }
 0x134   :  { %2950 = vmatpush3.bf16.msra.mxu1 %v3492_v3  ;;  %v2926_v3 = vld [vmem:[%s4063_s12] ss:$0 sm:$0xff] }
 0x135   :  { %2984 = vmatprep.subr.bf16.mxu1 %v3572_v5 }
 0x1c6   :  { %v1446_v9 = vpop.f32.mrb[0].mxu0  ;;  %v3841_v10 = vpop.f32.mrb[0].mxu1 }
 0x1c7   :  { %v3044_v11 = vadd.f32 %v1446_v9, %v288_v6  ;;  %v1448_v12 = vpop.f32.mrb[1].mxu0  ;;  %v1612_v13 = vpop.f32.mrb[1].mxu1  ;;  %v3046_v57 = vadd.f32 %v3841_v10, %v296_v54  ;;  %v1689_v6 = vld [vmem:[%s4055_s4] sm:$0x3]  ;;  %v3514_v54 = vld [vmem:[#allocation4 + $0x28] sm:$0xff]  }
 0x1c8   :  { %v3045_v14 = vadd.f32 %v1448_v12, %v292_v7  ;;  %v3047_v15 = vadd.f32 %v1612_v13, %v300_v8  ;;  %v1450_v16 = vpop.f32.mrb[2].mxu0  ;;  %v1614_v17 = vpop.f32.mrb[2].mxu1  ;;  %v1694_v7 = vrot.slane %v1689_v6, %v287_v2  ;;  %v1698_v8 = vrot.slane %v1689_v6, %v291_v4  ;;  %v3495_v2 = vld [vmem:[%s4058_s7 + $0x10] sm:$0xff]   ;;  %v3496_v4 = vld [vmem:[%s4058_s7 + $0x18] sm:$0xff]  }
 0x1c9   :  { %v1617_v18 = vmax.f32 %v3044_v11, 0.0  ;;  %v1451_v19 = vpop.f32.mrb[3].mxu0  ;;  %v1615_v20 = vpop.f32.mrb[3].mxu1  ;;  %v1619_v60 = vmax.f32 %v3046_v57, 0.0  ;;  %v2917_v57 = vld [vmem:[%s4061_s10] ss:$0 sm:$0xff] }
 0x1ca   :  { %v1618_v21 = vmax.f32 %v3045_v14, 0.0  ;;  %v1620_v22 = vmax.f32 %v3047_v15, 0.0  ;;  %v3497_v20 = vld [vmem:[%s4058_s7 + $0x20] sm:$0xff]  }
 0x1cb   :  { %v1621_v25 = vpack.c.bf16 %v1617_v18, %v1617_v18  ;;  %v1623_v61 = vpack.c.bf16 %v1619_v60, %v1619_v60  ;;  %v3493_v18 = vld [vmem:[%s4058_s7] sm:$0xff]  }
 0x1cc   :  { %v1622_v23 = vpack.c.bf16 %v1618_v21, %v1618_v21  ;;  %v1624_v27 = vpack.c.bf16 %v1620_v22, %v1620_v22  ;;  %v3498_v21 = vld [vmem:[%s4058_s7 + $0x28] sm:$0xff]   ;;  %v3499_v22 = vld [vmem:[%s4058_s7 + $0x30] sm:$0xff]  }
 0x1ce   :  { %2053 = vmatprep.mubr.bf16.mxu0 %v1622_v23  ;;  %v3500_v23 = vld [vmem:[%s4058_s7 + $0x38] sm:$0xff]  }
 0x1cf   :  { %2054 = vmatmul.mubr.bf16.vlgmr.msra.gmra.mrb[4].mxu0 %v1621_v25  ;;  %v2891_v25 = vld [vmem:[%s4057_s6] ss:$0 sm:$0xff] }
 0x1d0   :  { %2063 = vmatpush1.bf16.msra.mxu0 %v3429_v24  ;;  %2094 = vmatprep.mubr.bf16.mxu0 %v1624_v27 }
 0x1d1   :  { %2064 = vmatprep.subr.bf16.mxu0 %v3434_v26 }
 0x1d4   :  { %2065 = vmatpush1.bf16.msra.mxu0 %v3432_v28 }
 0x1d5   :  { %2066 = vmatprep.subr.bf16.mxu0 %v3437_v29 }
 0x1d8   :  { %2067 = vmatpush1.bf16.msra.mxu0 %v3435_v30 }
 0x1d9   :  { %2068 = vmatprep.subr.bf16.mxu0 %v3440_v31 }
 0x1dc   :  { %2069 = vmatpush1.bf16.msra.mxu0 %v3438_v32  ;;  %v3501_v32 = vld [vmem:[%s4060_s9] sm:$0xff]  }
 0x1dd   :  { %2070 = vmatprep.subr.bf16.mxu0 %v3443_v33 }
 0x1e0   :  { %2071 = vmatpush1.bf16.msra.mxu0 %v3441_v34  ;;  %v3502_v34 = vld [vmem:[%s4060_s9 + $0x8] sm:$0xff]  }
 0x1e1   :  { %2072 = vmatprep.subr.bf16.mxu0 %v3446_v35  ;;  %v3503_v35 = vld [vmem:[%s4060_s9 + $0x10] sm:$0xff]  }
 0x1e4   :  { %2073 = vmatpush1.bf16.msra.mxu0 %v3444_v36  ;;  %v3504_v36 = vld [vmem:[%s4060_s9 + $0x18] sm:$0xff]  }
 0x1e5   :  { %2074 = vmatprep.subr.bf16.mxu0 %v3449_v37  ;;  %v3505_v37 = vld [vmem:[%s4060_s9 + $0x20] sm:$0xff]  }
 0x1e8   :  { %2075 = vmatpush1.bf16.msra.mxu0 %v3447_v38  ;;  %v3506_v38 = vld [vmem:[%s4060_s9 + $0x28] sm:$0xff]  }
 0x1e9   :  { %2076 = vmatprep.subr.bf16.mxu0 %v3452_v39  ;;  %v3507_v39 = vld [vmem:[%s4060_s9 + $0x30] sm:$0xff]  }
 0x1ec   :  { %2077 = vmatpush1.bf16.msra.mxu0 %v3450_v40  ;;  %v3508_v40 = vld [vmem:[%s4060_s9 + $0x38] sm:$0xff]  }
 0x1ed   :  { %2078 = vmatprep.subr.bf16.mxu0 %v3455_v41  ;;  %v2908_v41 = vld [vmem:[%s4059_s8] ss:$0 sm:$0xff] }
 0x1f0   :  { %2079 = vmatpush1.bf16.msra.mxu0 %v3453_v42 }
 0x1f1   :  { %2080 = vmatprep.subr.bf16.mxu0 %v3458_v43 }
 0x1f4   :  { %2081 = vmatpush1.bf16.msra.mxu0 %v3456_v44 }
 0x1f5   :  { %2082 = vmatprep.subr.bf16.mxu0 %v3461_v45 }
 0x1f8   :  { %2083 = vmatpush1.bf16.msra.mxu0 %v3459_v46 }
 0x1f9   :  { %2084 = vmatprep.subr.bf16.mxu0 %v3464_v47 }
 0x1fc   :  { %2085 = vmatpush1.bf16.msra.mxu0 %v3462_v48  ;;  %v3509_v48 = vld [vmem:[#allocation4] sm:$0xff]  }
 0x1fd   :  { %2086 = vmatprep.subr.bf16.mxu0 %v3467_v49 }
 0x200   :  { %2087 = vmatpush1.bf16.msra.mxu0 %v3465_v50  ;;  %v3510_v50 = vld [vmem:[#allocation4 + $0x8] sm:$0xff]  }
 0x201   :  { %2088 = vmatprep.subr.bf16.mxu0 %v3470_v52  ;;  %v3512_v52 = vld [vmem:[#allocation4 + $0x18] sm:$0xff]  }
 0x204   :  { %2089 = vmatpush1.bf16.msra.mxu0 %v3468_v53  ;;  %v3513_v53 = vld [vmem:[#allocation4 + $0x20] sm:$0xff]  }
 0x205   :  { %2090 = vmatprep.subr.bf16.mxu0 %v3473_v55  ;;  %v3515_v55 = vld [vmem:[#allocation4 + $0x30] sm:$0xff]  }
 0x208   :  { %2091 = vmatpush1.bf16.msra.mxu0 %v3471_v56  ;;  %v3516_v56 = vld [vmem:[#allocation4 + $0x38] sm:$0xff]  }
 0x209   :  { %2092 = vmatprep.subr.bf16.mxu0 %v3476_v58 }
 0x20c   :  { %2093 = vmatpush1.bf16.msra.mxu0 %v3474_v59 }
 0x20f   :  { %2095 = vmatmul.mubr.bf16.vlgmr.msra.gmra.mrb[4].mxu0 %v1623_v61 }
 0x2e2   :  { %v2096_v9 = vpop.f32.mrb[4].mxu0 }
 0x2e3   :  { %v3048_v10 = vadd.f32 %v2096_v9, %v1694_v7  ;;  %v2098_v11 = vpop.f32.mrb[5].mxu0 }
 0x2e4   :  { %v3049_v12 = vadd.f32 %v2098_v11, %v1698_v8  ;;  %v2100_v13 = vpop.f32.mrb[6].mxu0 }
 0x2e5   :  { %v2103_v14 = vmax.f32 %v3048_v10, 0.0  ;;  %v2101_v15 = vpop.f32.mrb[7].mxu0 }
 0x2e6   :  { %v2104_v16 = vmax.f32 %v3049_v12, 0.0 }
 0x2e7   :  { %v2105_v19 = vpack.c.bf16 %v2103_v14, %v2103_v14 }
 0x2e8   :  { %v2106_v17 = vpack.c.bf16 %v2104_v16, %v2104_v16 }
 0x2ea   :  { %2274 = vmatprep.mubr.bf16.mxu1 %v2106_v17 }
 0x2eb   :  { %2275 = vmatmul.mubr.bf16.vlgmr.msra.gmra.mrb[4].mxu1 %v2105_v19 }
 0x2ec   :  { %2985 = vmatpush3.bf16.msra.mxu1 %v3493_v18  ;;  %3000 = vmatprep.mubr.msk.bf16.mxu1 %vm3573_vm1, %v3572_v5 }
 0x2ed   :  { %2986 = vmatprep.subr.bf16.mxu1 %v3572_v5 }
 0x2f0   :  { %2987 = vmatpush3.bf16.msra.mxu1 %v3494_v1 }
 0x2f1   :  { %2988 = vmatprep.subr.bf16.mxu1 %v3572_v5 }
 0x2f4   :  { %2989 = vmatpush3.bf16.msra.mxu1 %v3495_v2 }
 0x2f5   :  { %2990 = vmatprep.subr.bf16.mxu1 %v3572_v5 }
 0x2f8   :  { %2991 = vmatpush3.bf16.msra.mxu1 %v3496_v4 }
 0x2f9   :  { %2992 = vmatprep.subr.bf16.mxu1 %v3572_v5 }
 0x2fc   :  { %2993 = vmatpush3.bf16.msra.mxu1 %v3497_v20 }
 0x2fd   :  { %2994 = vmatprep.subr.bf16.mxu1 %v3572_v5 }
 0x300   :  { %2995 = vmatpush3.bf16.msra.mxu1 %v3498_v21 }
 0x301   :  { %2996 = vmatprep.subr.bf16.mxu1 %v3572_v5 }
 0x304   :  { %2997 = vmatpush3.bf16.msra.mxu1 %v3499_v22 }
 0x305   :  { %2998 = vmatprep.subr.bf16.mxu1 %v3572_v5 }
 0x308   :  { %2999 = vmatpush3.bf16.msra.mxu1 %v3500_v23 }
 0x309   :  { %3004 = vmatprep.subr.bf16.mxu1 %v3572_v5 }
 0x3be   :  { %v2951_v24 = vpop.f32.mrb[4].mxu1 }
 0x3bf   :  { %v2952_v26 = vpop.f32.mrb[5].mxu1 }
 0x3c0   :  { %v2953_v27 = vadd.f32 %v2952_v26, %v2951_v24  ;;  %v2954_v28 = vpop.f32.mrb[6].mxu1 }
 0x3c1   :  { %v2955_v29 = vpop.f32.mrb[7].mxu1 }
 0x3c2   :  { %v2277_v30 = vadd.f32 %v2953_v27, %v2891_v25 }
 0x3c4   :  { %v2282_v31 = vmax.f32 %v2277_v30, 0.0 }
 0x3c6   :  { %v2283_v33 = vpack.c.bf16 %v2282_v31, %v2282_v31 }
 0x3c8   :  { %3001 = vmatmul.mubr.bf16.vlgmr.msra.gmra.mrb[8].mxu1 %v2283_v33 }
 0x3c9   :  { %3005 = vmatpush3.bf16.msra.mxu1 %v3501_v32  ;;  %3020 = vmatprep.mubr.msk.bf16.mxu1 %vm3573_vm1, %v3572_v5 }
 0x3ca   :  { %3006 = vmatprep.subr.bf16.mxu1 %v3572_v5 }
 0x3cd   :  { %3007 = vmatpush3.bf16.msra.mxu1 %v3502_v34 }
 0x3ce   :  { %3008 = vmatprep.subr.bf16.mxu1 %v3572_v5 }
 0x3d1   :  { %3009 = vmatpush3.bf16.msra.mxu1 %v3503_v35 }
 0x3d2   :  { %3010 = vmatprep.subr.bf16.mxu1 %v3572_v5 }
 0x3d5   :  { %3011 = vmatpush3.bf16.msra.mxu1 %v3504_v36 }
 0x3d6   :  { %3012 = vmatprep.subr.bf16.mxu1 %v3572_v5 }
 0x3d9   :  { %3013 = vmatpush3.bf16.msra.mxu1 %v3505_v37 }
 0x3da   :  { %3014 = vmatprep.subr.bf16.mxu1 %v3572_v5 }
 0x3dd   :  { %3015 = vmatpush3.bf16.msra.mxu1 %v3506_v38 }
 0x3de   :  { %3016 = vmatprep.subr.bf16.mxu1 %v3572_v5 }
 0x3e1   :  { %3017 = vmatpush3.bf16.msra.mxu1 %v3507_v39 }
 0x3e2   :  { %3018 = vmatprep.subr.bf16.mxu1 %v3572_v5 }
 0x3e5   :  { %3019 = vmatpush3.bf16.msra.mxu1 %v3508_v40 }
 0x3e6   :  { %3024 = vmatprep.subr.bf16.mxu1 %v3572_v5 }
 0x49b   :  { %v2389_v42 = vpop.f32.mrb[8].mxu1 }
 0x49c   :  { %v2390_v43 = vadd.f32 %v2908_v41, %v2389_v42  ;;  %v3002_v44 = vpop.f32.mrb[9].mxu1 }
 0x49d   :  { %v2392_v45 = vpop.f32.mrb[10].mxu1 }
 0x49e   :  { %v2395_v46 = vmax.f32 %v2390_v43, 0.0  ;;  %v3003_v47 = vpop.f32.mrb[11].mxu1 }
 0x4a0   :  { %v2396_v49 = vpack.c.bf16 %v2395_v46, %v2395_v46 }
 0x4a2   :  { %3021 = vmatmul.mubr.bf16.vlgmr.msra.gmra.mrb[12].mxu1 %v2396_v49 }
 0x4a3   :  { %3025 = vmatpush3.bf16.msra.mxu1 %v3509_v48  ;;  %3040 = vmatprep.mubr.msk.bf16.mxu1 %vm3573_vm1, %v3572_v5 }
 0x4a4   :  { %3026 = vmatprep.subr.bf16.mxu1 %v3572_v5 }
 0x4a7   :  { %3027 = vmatpush3.bf16.msra.mxu1 %v3510_v50 }
 0x4a8   :  { %3028 = vmatprep.subr.bf16.mxu1 %v3572_v5 }
 0x4ab   :  { %3029 = vmatpush3.bf16.msra.mxu1 %v3511_v51 }
 0x4ac   :  { %3030 = vmatprep.subr.bf16.mxu1 %v3572_v5 }
 0x4af   :  { %3031 = vmatpush3.bf16.msra.mxu1 %v3512_v52 }
 0x4b0   :  { %3032 = vmatprep.subr.bf16.mxu1 %v3572_v5 }
 0x4b3   :  { %3033 = vmatpush3.bf16.msra.mxu1 %v3513_v53 }
 0x4b4   :  { %3034 = vmatprep.subr.bf16.mxu1 %v3572_v5 }
 0x4b7   :  { %3035 = vmatpush3.bf16.msra.mxu1 %v3514_v54 }
 0x4b8   :  { %3036 = vmatprep.subr.bf16.mxu1 %v3572_v5 }
 0x4bb   :  { %3037 = vmatpush3.bf16.msra.mxu1 %v3515_v55 }
 0x4bc   :  { %3038 = vmatprep.subr.bf16.mxu1 %v3572_v5 }
 0x4bf   :  { %3039 = vmatpush3.bf16.msra.mxu1 %v3516_v56 }
 0x575   :  { %v2502_v58 = vpop.f32.mrb[12].mxu1 }
 0x576   :  { %v2503_v59 = vadd.f32 %v2917_v57, %v2502_v58  ;;  %v3022_v60 = vpop.f32.mrb[13].mxu1 }
 0x577   :  { %v2505_v61 = vpop.f32.mrb[14].mxu1 }
 0x578   :  { %v2508_v62 = vmax.f32 %v2503_v59, 0.0  ;;  %v3023_v63 = vpop.f32.mrb[15].mxu1 }
 0x57a   :  { %v2509_v0 = vpack.c.bf16 %v2508_v62, %v2508_v62 }
 0x57c   :  { %3041 = vmatmul.mubr.bf16.vlgmr.msra.gmra.mrb[16].mxu1 %v2509_v0 }
 0x64f   :  { %v2615_v6 = vpop.f32.mrb[16].mxu1 }
 0x650   :  { %v2616_v5 = vadd.f32 %v2926_v3, %v2615_v6  ;;  %v3042_v7 = vpop.f32.mrb[17].mxu1 }
 0x651   :  { %v2618_v8 = vpop.f32.mrb[18].mxu1 }
 0x652   :  { %v2621_v9 = vpack.c.bf16 %v2616_v5, %v2616_v5  ;;  %v3043_v10 = vpop.f32.mrb[19].mxu1 }
 0x654   :  { %2622 = vst [vmem:[%s4064_s13] sm:$0xf] %v2621_v9 }
 0x655   :  { %2627 = vsyncpa [#allocation3], 1 }
 0x656   :  { %2628 = vsyncpa [#allocation5], 1 }

</bundles_post_ra>
